<compile_context>
chip_gen: v7x
topology: tpu7x:2x2x1
jax: 0.10.0
libtpu: 0.0.40
codegen_flags: <defaults>
</compile_context>

<pallas_src>
import jax
import jax.numpy as jnp
from jax.experimental import pallas as pl
from jax.experimental.pallas import tpu as pltpu

# TODO(synk): confirm eps against the actual Ultravox checkpoint's RMSNorm config.
RMS_EPS = 1e-6


def _round_up(n, m):
    return -(-n // m) * m


def projector_kernel(x_ref, g_pre_ref, w1a_ref, w1b_ref, w2_ref, g_post_ref,
                     o_ref, xn_ref, acc_ref):
    # x_ref:      (TR, D_in)    bf16  activation row tile
    # g_pre_ref:  (1, D_in)     f32   RMSNorm weight (pre)
    # w1a_ref:    (D_in, TH)    bf16  first swiglu half of linear_1.T (hidden tile)
    # w1b_ref:    (D_in, TH)    bf16  second swiglu half of linear_1.T (hidden tile)
    # w2_ref:     (TH, D_out)   bf16  linear_2.T (hidden tile)
    # g_post_ref: (1, D_out)    f32   RMSNorm weight (post)
    # xn_ref:     (TR, D_in)    bf16  scratch: cached normalized rows
    # acc_ref:    (TR, D_out)   f32   scratch: linear_2 accumulator
    n = pl.program_id(1)

    @pl.when(n == 0)
    def _():
        # RMSNorm (pre) in f32, once per row tile; cache bf16 result for all
        # hidden tiles of this row tile.
        x = x_ref[...].astype(jnp.float32)
        var = jnp.mean(x * x, axis=-1, keepdims=True)
        xn = x * jax.lax.rsqrt(var + RMS_EPS) * g_pre_ref[...]
        xn_ref[...] = xn.astype(jnp.bfloat16)
        acc_ref[...] = jnp.zeros_like(acc_ref)

    xb = xn_ref[...]
    # linear_1 (no bias), pre-split swiglu halves: bf16 in, f32 MXU accumulation.
    a = jnp.dot(xb, w1a_ref[...], preferred_element_type=jnp.float32)
    b = jnp.dot(xb, w1b_ref[...], preferred_element_type=jnp.float32)
    # FlippedSiluAndMul: h = [a | b]; out = silu(b) * a   (keep f32 on VPU/EUP).
    g = (b * jax.nn.sigmoid(b)) * a
    # linear_2 (no bias) partial product, accumulated over hidden tiles in f32.
    acc_ref[...] += jnp.dot(g.astype(jnp.bfloat16), w2_ref[...],
                            preferred_element_type=jnp.float32)

    @pl.when(n == pl.num_programs(1) - 1)
    def _():
        # RMSNorm (post) in f32 and store.
        y = acc_ref[...]
        var = jnp.mean(y * y, axis=-1, keepdims=True)
        y = y * jax.lax.rsqrt(var + RMS_EPS) * g_post_ref[...]
        o_ref[...] = y.astype(o_ref.dtype)


def _vmem_capacity_bytes():
    try:
        return int(pltpu.get_tpu_info().vmem_capacity_bytes)
    except Exception:
        return 64 * 2**20  # conservative: v7x per-TensorCore VMEM


def _pick_tile_rows(n_rows, vmem_cap):
    small_vmem = vmem_cap <= 96 * 2**20            # v7x-class chip (64 MiB)
    tr = 256 if small_vmem else 512                # v5e/v6e: 512 amortizes MXU weight pushes
    tr = max(128, min(tr, _round_up(n_rows, 128)))  # never below 128 (bf16 sublane packing)
    # v7x has 2 TensorCores: keep >=4 row tiles on small batches so the
    # "parallel" axis can be sharded evenly across cores.
    if small_vmem and tr > 128 and pl.cdiv(n_rows, tr) < 4:
        tr = 128
    return tr


def _pick_hidden_tile(half, tr, d_in, d_out, x_bytes, out_bytes, vmem_cap):
    """Largest hidden tile whose (double-buffered) tiles fit ~65% of VMEM."""
    budget = int(0.65 * vmem_cap)
    for th in (2048, 1024, 512, 256, 128):
        if th > _round_up(half, 128):
            continue
        w_tiles = 2 * 2 * (2 * d_in * th + th * d_out)          # bf16 W tiles x2 buffers
        a_tiles = (2 * tr * d_in * x_bytes                      # x tile x2 buffers
                   + tr * d_in * 2                              # xn scratch (bf16)
                   + tr * d_out * 4                             # f32 accumulator
                   + 2 * tr * d_out * out_bytes)                # out tile x2 buffers
        if w_tiles + a_tiles <= budget:
            return th
    return 128


def ultravox_projector(audio_features, params, stack_factor=8):
    """audio_features: (B, T, C). Returns (B, ceil(T/stack_factor), text_hidden)."""
    B, T, C = audio_features.shape
    sf = stack_factor

    # StackAudioFrames: pad time axis, fold frames into features (layout glue,
    # fused by XLA with the bf16 cast below).
    T_pad = _round_up(T, sf)
    x = audio_features
    if T_pad != T:
        x = jnp.pad(x, ((0, 0), (0, T_pad - T), (0, 0)))
    S = T_pad // sf
    D_in = C * sf
    N = B * S
    # bf16 activation DMA; RMSNorm math stays f32 inside the kernel.
    x2 = x.reshape(N, D_in).astype(jnp.bfloat16)

    # Weight prep: pre-transpose, pre-split W1 into swiglu halves, cast to bf16.
    w1 = jnp.asarray(params["w1"])              # (H, D_in)      nn.Linear(D_in, H).weight
    w2 = jnp.asarray(params["w2"])              # (D_out, H//2)  nn.Linear(H//2, D_out).weight
    H = w1.shape[0]
    half = H // 2
    D_out = w2.shape[0]
    out_dtype = audio_features.dtype
    out_bytes = jnp.dtype(out_dtype).itemsize

    vmem_cap = _vmem_capacity_bytes()
    tr = _pick_tile_rows(N, vmem_cap)
    th = _pick_hidden_tile(half, tr, D_in, D_out, x2.dtype.itemsize, out_bytes, vmem_cap)
    half_pad = _round_up(half, th)
    n_tiles = half_pad // th

    w1a_t = jnp.asarray(w1[:half].T, dtype=jnp.bfloat16)     # (D_in, half)
    w1b_t = jnp.asarray(w1[half:].T, dtype=jnp.bfloat16)     # (D_in, half)
    w2_t = jnp.asarray(w2.T, dtype=jnp.bfloat16)             # (half, D_out)
    if half_pad != half:
        # Zero padding is exact: padded columns give a=b=0 -> silu(0)*0 = 0,
        # and the matching zero rows of W2 add nothing to the accumulator.
        pad = half_pad - half
        w1a_t = jnp.pad(w1a_t, ((0, 0), (0, pad)))
        w1b_t = jnp.pad(w1b_t, ((0, 0), (0, pad)))
        w2_t = jnp.pad(w2_t, ((0, pad), (0, 0)))
    g_pre = jnp.asarray(params["ln_pre_w"], jnp.float32).reshape(1, D_in)
    g_post = jnp.asarray(params["ln_post_w"], jnp.float32).reshape(1, D_out)

    # VMEM residency (weights single-buffered when grid-invariant; cap at 85% of
    # the chip's physical VMEM so we never request more than e.g. v7x's 64 MiB).
    w_bufs = 1 if n_tiles == 1 else 2
    resident = (w_bufs * 2 * (2 * D_in * th + th * D_out)           # bf16 weight tiles
                + 2 * tr * D_in * x2.dtype.itemsize                 # x tile, x2 buffers
                + tr * D_in * 2                                     # xn scratch (bf16)
                + tr * D_out * 4                                    # f32 accumulator
                + 2 * tr * D_out * out_bytes                        # out tile, x2 buffers
                + 4 * (D_in + D_out))                               # gammas
    vmem_limit = int(min(int(0.85 * vmem_cap), max(resident * 5 // 4, 32 * 2**20)))
    vmem_limit = max(vmem_limit, resident + (1 << 20))

    # Scheduler hint (advisory).
    flops = 2 * N * (D_in * 2 * half_pad + half_pad * D_out)
    transcendentals = N * (half_pad + 2)                            # sigmoid + 2 rsqrt per row
    bytes_accessed = (x2.size * x2.dtype.itemsize
                      + 2 * (w1a_t.size + w1b_t.size + w2_t.size)
                      + 4 * (g_pre.size + g_post.size)
                      + N * D_out * out_bytes)

    # No wrapper-side row padding: Pallas masks the partial last row block
    # (garbage pad rows are row-local and never written back).
    grid = (pl.cdiv(N, tr), n_tiles)

    def run(try_single_buffer):
        def spec(shape, index_map, grid_invariant):
            if try_single_buffer and grid_invariant:
                try:
                    return pl.BlockSpec(shape, index_map, pipeline_mode=pl.Buffered(1))
                except Exception:
                    pass
            return pl.BlockSpec(shape, index_map)

        w_invariant = n_tiles == 1  # weight tiles move only along the hidden axis
        return pl.pallas_call(
            projector_kernel,
            out_shape=jax.ShapeDtypeStruct((N, D_out), out_dtype),
            grid=grid,
            in_specs=[
                pl.BlockSpec((tr, D_in), lambda i, n: (i, 0)),
                spec((1, D_in), lambda i, n: (0, 0), True),
                spec((D_in, th), lambda i, n: (0, n), w_invariant),
                spec((D_in, th), lambda i, n: (0, n), w_invariant),
                spec((th, D_out), lambda i, n: (n, 0), w_invariant),
                spec((1, D_out), lambda i, n: (0, 0), True),
            ],
            out_specs=pl.BlockSpec((tr, D_out), lambda i, n: (i, 0)),
            scratch_shapes=[
                pltpu.VMEM((tr, D_in), jnp.bfloat16),   # cached normalized rows
                pltpu.VMEM((tr, D_out), jnp.float32),   # linear_2 accumulator
            ],
            compiler_params=pltpu.CompilerParams(
                dimension_semantics=("parallel", "arbitrary"),
                vmem_limit_bytes=vmem_limit,
            ),
            cost_estimate=pl.CostEstimate(
                flops=flops,
                transcendentals=transcendentals,
                bytes_accessed=bytes_accessed,
            ),
        )(x2, g_pre, w1a_t, w1b_t, w2_t, g_post)

    try:
        out = run(try_single_buffer=True)
    except Exception:
        # Fallback for JAX versions without BlockSpec pipeline_mode / pl.Buffered.
        out = run(try_single_buffer=False)

    return out.reshape(B, S, D_out)


def reference_projector(audio_features, params, stack_factor=8,
                        matmul_dtype=jnp.float32, activation_dtype=None):
    """Pure-JAX reference mirroring the PyTorch module semantics."""
    B, T, C = audio_features.shape
    sf = stack_factor
    T_pad = _round_up(T, sf)
    x = jnp.pad(audio_features, ((0, 0), (0, T_pad - T), (0, 0)))
    x = x.reshape(B, T_pad // sf, C * sf)
    if activation_dtype is not None:
        x = x.astype(activation_dtype)
    x = x.astype(jnp.float32)

    def rmsnorm(v, w):
        var = jnp.mean(v * v, axis=-1, keepdims=True)
        return v * jax.lax.rsqrt(var + RMS_EPS) * w.astype(jnp.float32)

    x = rmsnorm(x, params["ln_pre_w"])
    w1 = params["w1"]
    w2 = params["w2"]
    half = w1.shape[0] // 2
    xm = x.astype(matmul_dtype)
    a = jnp.dot(xm, w1[:half].T.astype(matmul_dtype), preferred_element_type=jnp.float32)
    b = jnp.dot(xm, w1[half:].T.astype(matmul_dtype), preferred_element_type=jnp.float32)
    g = (b * jax.nn.sigmoid(b)) * a
    y = jnp.dot(g.astype(matmul_dtype), w2.T.astype(matmul_dtype),
                preferred_element_type=jnp.float32)
    return rmsnorm(y, params["ln_post_w"])


if __name__ == "__main__":
    # Small config consistent with the module:
    #   audio_config.hidden_size = 16, stack_factor = 8  -> dim = 128
    #   config.hidden_size (projector hidden) = 256, swiglu -> 128
    #   text_config.hidden_size = 128
    B, T, C = 2, 12, 16
    STACK = 8
    D_IN = C * STACK            # 128
    HIDDEN = 256
    TEXT_HIDDEN = 128

    key = jax.random.PRNGKey(0)
    k0, k1, k2, k3, k4 = jax.random.split(key, 5)

    audio_features = jax.random.normal(k0, (B, T, C), dtype=jnp.float32)
    params = {
        "ln_pre_w": 1.0 + 0.01 * jax.random.normal(k1, (D_IN,), dtype=jnp.float32),
        # nn.Linear(D_IN, HIDDEN).weight
        "w1": 0.02 * jax.random.normal(k2, (HIDDEN, D_IN), dtype=jnp.float32),
        # nn.Linear(HIDDEN//2, TEXT_HIDDEN).weight
        "w2": 0.02 * jax.random.normal(k3, (TEXT_HIDDEN, HIDDEN // 2), dtype=jnp.float32),
        "ln_post_w": 1.0 + 0.01 * jax.random.normal(k4, (TEXT_HIDDEN,), dtype=jnp.float32),
    }

    out = jax.block_until_ready(
        ultravox_projector(audio_features, params, stack_factor=STACK))

    S_out = (T + STACK - 1) // STACK
    assert out.shape == (B, S_out, TEXT_HIDDEN), out.shape
    assert out.dtype == audio_features.dtype, out.dtype

    # Same-numerics reference (bf16 activation + bf16 matmul inputs, f32 acc).
    ref_tight = reference_projector(audio_features, params, stack_factor=STACK,
                                    matmul_dtype=jnp.bfloat16,
                                    activation_dtype=jnp.bfloat16)
    err_tight = float(jnp.max(jnp.abs(out - ref_tight)))
    assert jnp.allclose(out, ref_tight, atol=2e-3, rtol=2e-3), err_tight

    # Full-f32 reference — loose sanity check (bf16 quantization tolerated).
    ref_f32 = reference_projector(audio_features, params, stack_factor=STACK,
                                  matmul_dtype=jnp.float32)
    err_f32 = float(jnp.max(jnp.abs(out - ref_f32)))
    assert jnp.allclose(out, ref_f32, atol=5e-2, rtol=5e-2), err_f32

    print("KERNEL_OK")
</pallas_src>

<mosaic_0001>
module attributes {stable_mosaic.version = 11 : i64} {
  func.func @projector_kernel(%arg0: i32, %arg1: i32, %arg2: memref<128x128xbf16, #tpu.memory_space<vmem>>, %arg3: memref<1x128xf32, #tpu.memory_space<vmem>>, %arg4: memref<128x128xbf16, #tpu.memory_space<vmem>>, %arg5: memref<128x128xbf16, #tpu.memory_space<vmem>>, %arg6: memref<128x128xbf16, #tpu.memory_space<vmem>>, %arg7: memref<1x128xf32, #tpu.memory_space<vmem>>, %arg8: memref<128x128xf32, #tpu.memory_space<vmem>>, %arg9: memref<128x128xbf16, #tpu.memory_space<vmem>>, %arg10: memref<128x128xf32, #tpu.memory_space<vmem>>) attributes {dimension_semantics = [#tpu.dimension_semantics<parallel>, #tpu.dimension_semantics<arbitrary>], iteration_bounds = array<i64: 1, 1>, scalar_prefetch = 0 : i64, scratch_operands = 2 : i64, tpu.core_type = #tpu.core_type<tc>, window_params = [{transform_indices = @transform_0, window_bounds = array<i64: 128, 128>}, {pipeline_mode = #tpu.pipeline_mode<synchronous>, transform_indices = @transform_1, window_bounds = array<i64: 1, 128>}, {pipeline_mode = #tpu.pipeline_mode<synchronous>, transform_indices = @transform_2, window_bounds = array<i64: 128, 128>}, {pipeline_mode = #tpu.pipeline_mode<synchronous>, transform_indices = @transform_3, window_bounds = array<i64: 128, 128>}, {pipeline_mode = #tpu.pipeline_mode<synchronous>, transform_indices = @transform_4, window_bounds = array<i64: 128, 128>}, {pipeline_mode = #tpu.pipeline_mode<synchronous>, transform_indices = @transform_5, window_bounds = array<i64: 1, 128>}, {transform_indices = @transform_6, window_bounds = array<i64: 128, 128>}]} {
    %c0_i32 = arith.constant 0 : i32
    %0 = arith.cmpi eq, %arg1, %c0_i32 : i32
    %1 = arith.extui %0 : i1 to i32
    %c0_i32_0 = arith.constant 0 : i32
    %2 = arith.cmpi ne, %1, %c0_i32_0 : i32
    scf.if %2 {
      %c0_17 = arith.constant 0 : index
      %c0_18 = arith.constant 0 : index
      %24 = vector.load %arg2[%c0_17, %c0_18] : memref<128x128xbf16, #tpu.memory_space<vmem>>, vector<128x128xbf16>
      %25 = arith.extf %24 : vector<128x128xbf16> to vector<128x128xf32>
      %26 = arith.mulf %25, %25 : vector<128x128xf32>
      %cst_19 = arith.constant dense<0.000000e+00> : vector<128xf32>
      %27 = vector.multi_reduction <add>, %26, %cst_19 [1] : vector<128x128xf32> to vector<128xf32>
      %28 = vector.shape_cast %27 : vector<128xf32> to vector<128x1xf32>
      %cst_20 = arith.constant 1.280000e+02 : f32
      %29 = vector.broadcast %cst_20 : f32 to vector<128x1xf32>
      %30 = arith.divf %28, %29 : vector<128x1xf32>
      %cst_21 = arith.constant 9.99999997E-7 : f32
      %31 = vector.broadcast %cst_21 : f32 to vector<128x1xf32>
      %32 = arith.addf %30, %31 : vector<128x1xf32>
      %33 = math.rsqrt %32 : vector<128x1xf32>
      %34 = vector.broadcast %33 : vector<128x1xf32> to vector<128x128xf32>
      %35 = arith.mulf %25, %34 : vector<128x128xf32>
      %c0_22 = arith.constant 0 : index
      %c0_23 = arith.constant 0 : index
      %36 = vector.load %arg3[%c0_22, %c0_23] : memref<1x128xf32, #tpu.memory_space<vmem>>, vector<1x128xf32>
      %37 = vector.broadcast %36 : vector<1x128xf32> to vector<128x128xf32>
      %38 = arith.mulf %35, %37 : vector<128x128xf32>
      %39 = arith.truncf %38 : vector<128x128xf32> to vector<128x128xbf16>
      %c0_24 = arith.constant 0 : index
      %c0_25 = arith.constant 0 : index
      %40 = vector.load %arg9[%c0_24, %c0_25] : memref<128x128xbf16, #tpu.memory_space<vmem>>, vector<128x128xbf16>
      tpu.vector_store %arg9[%c0_24, %c0_25], %39 {strides = array<i32>} : memref<128x128xbf16, #tpu.memory_space<vmem>>, vector<128x128xbf16>,
      %cst_26 = arith.constant 0.000000e+00 : f32
      %41 = vector.broadcast %cst_26 : f32 to vector<128x128xf32>
      %c0_27 = arith.constant 0 : index
      %c0_28 = arith.constant 0 : index
      %42 = vector.load %arg10[%c0_27, %c0_28] : memref<128x128xf32, #tpu.memory_space<vmem>>, vector<128x128xf32>
      tpu.vector_store %arg10[%c0_27, %c0_28], %41 {strides = array<i32>} : memref<128x128xf32, #tpu.memory_space<vmem>>, vector<128x128xf32>,
    } else {
    }
    %c0 = arith.constant 0 : index
    %c0_1 = arith.constant 0 : index
    %3 = vector.load %arg9[%c0, %c0_1] : memref<128x128xbf16, #tpu.memory_space<vmem>>, vector<128x128xbf16>
    %c0_2 = arith.constant 0 : index
    %c0_3 = arith.constant 0 : index
    %4 = vector.load %arg4[%c0_2, %c0_3] : memref<128x128xbf16, #tpu.memory_space<vmem>>, vector<128x128xbf16>
    %cst = arith.constant dense<0.000000e+00> : vector<128x128xf32>
    %5 = tpu.matmul %3, %4, %cst {dimension_numbers = #tpu.dot_dimension_numbers<[1], [0], [0], [1], [0, 0, 1, 1], [], []>} : vector<128x128xbf16>, vector<128x128xbf16>, vector<128x128xf32> -> vector<128x128xf32>
    %c0_4 = arith.constant 0 : index
    %c0_5 = arith.constant 0 : index
    %6 = vector.load %arg5[%c0_4, %c0_5] : memref<128x128xbf16, #tpu.memory_space<vmem>>, vector<128x128xbf16>
    %cst_6 = arith.constant dense<0.000000e+00> : vector<128x128xf32>
    %7 = tpu.matmul %3, %6, %cst_6 {dimension_numbers = #tpu.dot_dimension_numbers<[1], [0], [0], [1], [0, 0, 1, 1], [], []>} : vector<128x128xbf16>, vector<128x128xbf16>, vector<128x128xf32> -> vector<128x128xf32>
    %8 = arith.negf %7 : vector<128x128xf32>
    %9 = math.exp %8 : vector<128x128xf32>
    %cst_7 = arith.constant 1.000000e+00 : f32
    %10 = vector.broadcast %cst_7 : f32 to vector<128x128xf32>
    %11 = arith.addf %10, %9 : vector<128x128xf32>
    %12 = arith.divf %10, %11 : vector<128x128xf32>
    %13 = arith.mulf %7, %12 : vector<128x128xf32>
    %14 = arith.mulf %13, %5 : vector<128x128xf32>
    %c0_8 = arith.constant 0 : index
    %c0_9 = arith.constant 0 : index
    %15 = vector.load %arg10[%c0_8, %c0_9] : memref<128x128xf32, #tpu.memory_space<vmem>>, vector<128x128xf32>
    %16 = arith.truncf %14 : vector<128x128xf32> to vector<128x128xbf16>
    %c0_10 = arith.constant 0 : index
    %c0_11 = arith.constant 0 : index
    %17 = vector.load %arg6[%c0_10, %c0_11] : memref<128x128xbf16, #tpu.memory_space<vmem>>, vector<128x128xbf16>
    %cst_12 = arith.constant dense<0.000000e+00> : vector<128x128xf32>
    %18 = tpu.matmul %16, %17, %cst_12 {dimension_numbers = #tpu.dot_dimension_numbers<[1], [0], [0], [1], [0, 0, 1, 1], [], []>} : vector<128x128xbf16>, vector<128x128xbf16>, vector<128x128xf32> -> vector<128x128xf32>
    %19 = arith.addf %15, %18 : vector<128x128xf32>
    %c0_13 = arith.constant 0 : index
    %c0_14 = arith.constant 0 : index
    %20 = vector.load %arg10[%c0_13, %c0_14] : memref<128x128xf32, #tpu.memory_space<vmem>>, vector<128x128xf32>
    tpu.vector_store %arg10[%c0_13, %c0_14], %19 {strides = array<i32>} : memref<128x128xf32, #tpu.memory_space<vmem>>, vector<128x128xf32>,
    %c0_i32_15 = arith.constant 0 : i32
    %21 = arith.cmpi eq, %arg1, %c0_i32_15 : i32
    %22 = arith.extui %21 : i1 to i32
    %c0_i32_16 = arith.constant 0 : i32
    %23 = arith.cmpi ne, %22, %c0_i32_16 : i32
    scf.if %23 {
      %c0_17 = arith.constant 0 : index
      %c0_18 = arith.constant 0 : index
      %24 = vector.load %arg10[%c0_17, %c0_18] : memref<128x128xf32, #tpu.memory_space<vmem>>, vector<128x128xf32>
      %25 = arith.mulf %24, %24 : vector<128x128xf32>
      %cst_19 = arith.constant dense<0.000000e+00> : vector<128xf32>
      %26 = vector.multi_reduction <add>, %25, %cst_19 [1] : vector<128x128xf32> to vector<128xf32>
      %27 = vector.shape_cast %26 : vector<128xf32> to vector<128x1xf32>
      %cst_20 = arith.constant 1.280000e+02 : f32
      %28 = vector.broadcast %cst_20 : f32 to vector<128x1xf32>
      %29 = arith.divf %27, %28 : vector<128x1xf32>
      %cst_21 = arith.constant 9.99999997E-7 : f32
      %30 = vector.broadcast %cst_21 : f32 to vector<128x1xf32>
      %31 = arith.addf %29, %30 : vector<128x1xf32>
      %32 = math.rsqrt %31 : vector<128x1xf32>
      %33 = vector.broadcast %32 : vector<128x1xf32> to vector<128x128xf32>
      %34 = arith.mulf %24, %33 : vector<128x128xf32>
      %c0_22 = arith.constant 0 : index
      %c0_23 = arith.constant 0 : index
      %35 = vector.load %arg7[%c0_22, %c0_23] : memref<1x128xf32, #tpu.memory_space<vmem>>, vector<1x128xf32>
      %36 = vector.broadcast %35 : vector<1x128xf32> to vector<128x128xf32>
      %37 = arith.mulf %34, %36 : vector<128x128xf32>
      %c0_24 = arith.constant 0 : index
      %c0_25 = arith.constant 0 : index
      %38 = vector.load %arg8[%c0_24, %c0_25] : memref<128x128xf32, #tpu.memory_space<vmem>>, vector<128x128xf32>
      tpu.vector_store %arg8[%c0_24, %c0_25], %37 {strides = array<i32>} : memref<128x128xf32, #tpu.memory_space<vmem>>, vector<128x128xf32>,
    } else {
    }
    return
  }
  func.func @transform_0(%arg0: i32, %arg1: i32) -> (i32, i32) {
    %c0_i32 = arith.constant 0 : i32
    %c0_i32_0 = arith.constant 0 : i32
    return %arg0, %c0_i32 : i32, i32
  }
  func.func @transform_1(%arg0: i32, %arg1: i32) -> (i32, i32) {
    %c0_i32 = arith.constant 0 : i32
    %c0_i32_0 = arith.constant 0 : i32
    %c0_i32_1 = arith.constant 0 : i32
    return %c0_i32, %c0_i32_0 : i32, i32
  }
  func.func @transform_2(%arg0: i32, %arg1: i32) -> (i32, i32) {
    %c0_i32 = arith.constant 0 : i32
    %c0_i32_0 = arith.constant 0 : i32
    return %c0_i32, %arg1 : i32, i32
  }
  func.func @transform_3(%arg0: i32, %arg1: i32) -> (i32, i32) {
    %c0_i32 = arith.constant 0 : i32
    %c0_i32_0 = arith.constant 0 : i32
    return %c0_i32, %arg1 : i32, i32
  }
  func.func @transform_4(%arg0: i32, %arg1: i32) -> (i32, i32) {
    %c0_i32 = arith.constant 0 : i32
    %c0_i32_0 = arith.constant 0 : i32
    return %arg1, %c0_i32 : i32, i32
  }
  func.func @transform_5(%arg0: i32, %arg1: i32) -> (i32, i32) {
    %c0_i32 = arith.constant 0 : i32
    %c0_i32_0 = arith.constant 0 : i32
    %c0_i32_1 = arith.constant 0 : i32
    return %c0_i32, %c0_i32_0 : i32, i32
  }
  func.func @transform_6(%arg0: i32, %arg1: i32) -> (i32, i32) {
    %c0_i32 = arith.constant 0 : i32
    %c0_i32_0 = arith.constant 0 : i32
    return %arg0, %c0_i32 : i32, i32
  }
}

module attributes {stable_mosaic.version = 11 : i64} {
  func.func @projector_kernel(%arg0: i32, %arg1: i32, %arg2: memref<128x128xbf16, #tpu.memory_space<vmem>>, %arg3: memref<1x128xf32, #tpu.memory_space<vmem>>, %arg4: memref<128x128xbf16, #tpu.memory_space<vmem>>, %arg5: memref<128x128xbf16, #tpu.memory_space<vmem>>, %arg6: memref<128x128xbf16, #tpu.memory_space<vmem>>, %arg7: memref<1x128xf32, #tpu.memory_space<vmem>>, %arg8: memref<128x128xf32, #tpu.memory_space<vmem>>, %arg9: memref<128x128xbf16, #tpu.memory_space<vmem>>, %arg10: memref<128x128xf32, #tpu.memory_space<vmem>>) attributes {dimension_semantics = [#tpu.dimension_semantics<parallel>, #tpu.dimension_semantics<arbitrary>], iteration_bounds = array<i64: 1, 1>, scalar_prefetch = 0 : i64, scratch_operands = 2 : i64, tpu.core_type = #tpu.core_type<tc>, window_params = [{transform_indices = @transform_0, window_bounds = array<i64: 128, 128>}, {pipeline_mode = #tpu.pipeline_mode<synchronous>, transform_indices = @transform_1, window_bounds = array<i64: 1, 128>}, {transform_indices = @transform_2, window_bounds = array<i64: 128, 128>}, {transform_indices = @transform_3, window_bounds = array<i64: 128, 128>}, {transform_indices = @transform_4, window_bounds = array<i64: 128, 128>}, {pipeline_mode = #tpu.pipeline_mode<synchronous>, transform_indices = @transform_5, window_bounds = array<i64: 1, 128>}, {transform_indices = @transform_6, window_bounds = array<i64: 128, 128>}]} {
    %c0_i32 = arith.constant 0 : i32
    %0 = arith.cmpi eq, %arg1, %c0_i32 : i32
    %1 = arith.extui %0 : i1 to i32
    %c0_i32_0 = arith.constant 0 : i32
    %2 = arith.cmpi ne, %1, %c0_i32_0 : i32
    scf.if %2 {
      %c0_17 = arith.constant 0 : index
      %c0_18 = arith.constant 0 : index
      %24 = vector.load %arg2[%c0_17, %c0_18] : memref<128x128xbf16, #tpu.memory_space<vmem>>, vector<128x128xbf16>
      %25 = arith.extf %24 : vector<128x128xbf16> to vector<128x128xf32>
      %26 = arith.mulf %25, %25 : vector<128x128xf32>
      %cst_19 = arith.constant dense<0.000000e+00> : vector<128xf32>
      %27 = vector.multi_reduction <add>, %26, %cst_19 [1] : vector<128x128xf32> to vector<128xf32>
      %28 = vector.shape_cast %27 : vector<128xf32> to vector<128x1xf32>
      %cst_20 = arith.constant 1.280000e+02 : f32
      %29 = vector.broadcast %cst_20 : f32 to vector<128x1xf32>
      %30 = arith.divf %28, %29 : vector<128x1xf32>
      %cst_21 = arith.constant 9.99999997E-7 : f32
      %31 = vector.broadcast %cst_21 : f32 to vector<128x1xf32>
      %32 = arith.addf %30, %31 : vector<128x1xf32>
      %33 = math.rsqrt %32 : vector<128x1xf32>
      %34 = vector.broadcast %33 : vector<128x1xf32> to vector<128x128xf32>
      %35 = arith.mulf %25, %34 : vector<128x128xf32>
      %c0_22 = arith.constant 0 : index
      %c0_23 = arith.constant 0 : index
      %36 = vector.load %arg3[%c0_22, %c0_23] : memref<1x128xf32, #tpu.memory_space<vmem>>, vector<1x128xf32>
      %37 = vector.broadcast %36 : vector<1x128xf32> to vector<128x128xf32>
      %38 = arith.mulf %35, %37 : vector<128x128xf32>
      %39 = arith.truncf %38 : vector<128x128xf32> to vector<128x128xbf16>
      %c0_24 = arith.constant 0 : index
      %c0_25 = arith.constant 0 : index
      %40 = vector.load %arg9[%c0_24, %c0_25] : memref<128x128xbf16, #tpu.memory_space<vmem>>, vector<128x128xbf16>
      tpu.vector_store %arg9[%c0_24, %c0_25], %39 {strides = array<i32>} : memref<128x128xbf16, #tpu.memory_space<vmem>>, vector<128x128xbf16>,
      %cst_26 = arith.constant 0.000000e+00 : f32
      %41 = vector.broadcast %cst_26 : f32 to vector<128x128xf32>
      %c0_27 = arith.constant 0 : index
      %c0_28 = arith.constant 0 : index
      %42 = vector.load %arg10[%c0_27, %c0_28] : memref<128x128xf32, #tpu.memory_space<vmem>>, vector<128x128xf32>
      tpu.vector_store %arg10[%c0_27, %c0_28], %41 {strides = array<i32>} : memref<128x128xf32, #tpu.memory_space<vmem>>, vector<128x128xf32>,
    } else {
    }
    %c0 = arith.constant 0 : index
    %c0_1 = arith.constant 0 : index
    %3 = vector.load %arg9[%c0, %c0_1] : memref<128x128xbf16, #tpu.memory_space<vmem>>, vector<128x128xbf16>
    %c0_2 = arith.constant 0 : index
    %c0_3 = arith.constant 0 : index
    %4 = vector.load %arg4[%c0_2, %c0_3] : memref<128x128xbf16, #tpu.memory_space<vmem>>, vector<128x128xbf16>
    %cst = arith.constant dense<0.000000e+00> : vector<128x128xf32>
    %5 = tpu.matmul %3, %4, %cst {dimension_numbers = #tpu.dot_dimension_numbers<[1], [0], [0], [1], [0, 0, 1, 1], [], []>} : vector<128x128xbf16>, vector<128x128xbf16>, vector<128x128xf32> -> vector<128x128xf32>
    %c0_4 = arith.constant 0 : index
    %c0_5 = arith.constant 0 : index
    %6 = vector.load %arg5[%c0_4, %c0_5] : memref<128x128xbf16, #tpu.memory_space<vmem>>, vector<128x128xbf16>
    %cst_6 = arith.constant dense<0.000000e+00> : vector<128x128xf32>
    %7 = tpu.matmul %3, %6, %cst_6 {dimension_numbers = #tpu.dot_dimension_numbers<[1], [0], [0], [1], [0, 0, 1, 1], [], []>} : vector<128x128xbf16>, vector<128x128xbf16>, vector<128x128xf32> -> vector<128x128xf32>
    %8 = arith.negf %7 : vector<128x128xf32>
    %9 = math.exp %8 : vector<128x128xf32>
    %cst_7 = arith.constant 1.000000e+00 : f32
    %10 = vector.broadcast %cst_7 : f32 to vector<128x128xf32>
    %11 = arith.addf %10, %9 : vector<128x128xf32>
    %12 = arith.divf %10, %11 : vector<128x128xf32>
    %13 = arith.mulf %7, %12 : vector<128x128xf32>
    %14 = arith.mulf %13, %5 : vector<128x128xf32>
    %c0_8 = arith.constant 0 : index
    %c0_9 = arith.constant 0 : index
    %15 = vector.load %arg10[%c0_8, %c0_9] : memref<128x128xf32, #tpu.memory_space<vmem>>, vector<128x128xf32>
    %16 = arith.truncf %14 : vector<128x128xf32> to vector<128x128xbf16>
    %c0_10 = arith.constant 0 : index
    %c0_11 = arith.constant 0 : index
    %17 = vector.load %arg6[%c0_10, %c0_11] : memref<128x128xbf16, #tpu.memory_space<vmem>>, vector<128x128xbf16>
    %cst_12 = arith.constant dense<0.000000e+00> : vector<128x128xf32>
    %18 = tpu.matmul %16, %17, %cst_12 {dimension_numbers = #tpu.dot_dimension_numbers<[1], [0], [0], [1], [0, 0, 1, 1], [], []>} : vector<128x128xbf16>, vector<128x128xbf16>, vector<128x128xf32> -> vector<128x128xf32>
    %19 = arith.addf %15, %18 : vector<128x128xf32>
    %c0_13 = arith.constant 0 : index
    %c0_14 = arith.constant 0 : index
    %20 = vector.load %arg10[%c0_13, %c0_14] : memref<128x128xf32, #tpu.memory_space<vmem>>, vector<128x128xf32>
    tpu.vector_store %arg10[%c0_13, %c0_14], %19 {strides = array<i32>} : memref<128x128xf32, #tpu.memory_space<vmem>>, vector<128x128xf32>,
    %c0_i32_15 = arith.constant 0 : i32
    %21 = arith.cmpi eq, %arg1, %c0_i32_15 : i32
    %22 = arith.extui %21 : i1 to i32
    %c0_i32_16 = arith.constant 0 : i32
    %23 = arith.cmpi ne, %22, %c0_i32_16 : i32
    scf.if %23 {
      %c0_17 = arith.constant 0 : index
      %c0_18 = arith.constant 0 : index
      %24 = vector.load %arg10[%c0_17, %c0_18] : memref<128x128xf32, #tpu.memory_space<vmem>>, vector<128x128xf32>
      %25 = arith.mulf %24, %24 : vector<128x128xf32>
      %cst_19 = arith.constant dense<0.000000e+00> : vector<128xf32>
      %26 = vector.multi_reduction <add>, %25, %cst_19 [1] : vector<128x128xf32> to vector<128xf32>
      %27 = vector.shape_cast %26 : vector<128xf32> to vector<128x1xf32>
      %cst_20 = arith.constant 1.280000e+02 : f32
      %28 = vector.broadcast %cst_20 : f32 to vector<128x1xf32>
      %29 = arith.divf %27, %28 : vector<128x1xf32>
      %cst_21 = arith.constant 9.99999997E-7 : f32
      %30 = vector.broadcast %cst_21 : f32 to vector<128x1xf32>
      %31 = arith.addf %29, %30 : vector<128x1xf32>
      %32 = math.rsqrt %31 : vector<128x1xf32>
      %33 = vector.broadcast %32 : vector<128x1xf32> to vector<128x128xf32>
      %34 = arith.mulf %24, %33 : vector<128x128xf32>
      %c0_22 = arith.constant 0 : index
      %c0_23 = arith.constant 0 : index
      %35 = vector.load %arg7[%c0_22, %c0_23] : memref<1x128xf32, #tpu.memory_space<vmem>>, vector<1x128xf32>
      %36 = vector.broadcast %35 : vector<1x128xf32> to vector<128x128xf32>
      %37 = arith.mulf %34, %36 : vector<128x128xf32>
      %c0_24 = arith.constant 0 : index
      %c0_25 = arith.constant 0 : index
      %38 = vector.load %arg8[%c0_24, %c0_25] : memref<128x128xf32, #tpu.memory_space<vmem>>, vector<128x128xf32>
      tpu.vector_store %arg8[%c0_24, %c0_25], %37 {strides = array<i32>} : memref<128x128xf32, #tpu.memory_space<vmem>>, vector<128x128xf32>,
    } else {
    }
    return
  }
  func.func @transform_0(%arg0: i32, %arg1: i32) -> (i32, i32) {
    %c0_i32 = arith.constant 0 : i32
    %c0_i32_0 = arith.constant 0 : i32
    return %arg0, %c0_i32 : i32, i32
  }
  func.func @transform_1(%arg0: i32, %arg1: i32) -> (i32, i32) {
    %c0_i32 = arith.constant 0 : i32
    %c0_i32_0 = arith.constant 0 : i32
    %c0_i32_1 = arith.constant 0 : i32
    return %c0_i32, %c0_i32_0 : i32, i32
  }
  func.func @transform_2(%arg0: i32, %arg1: i32) -> (i32, i32) {
    %c0_i32 = arith.constant 0 : i32
    %c0_i32_0 = arith.constant 0 : i32
    return %c0_i32, %arg1 : i32, i32
  }
  func.func @transform_3(%arg0: i32, %arg1: i32) -> (i32, i32) {
    %c0_i32 = arith.constant 0 : i32
    %c0_i32_0 = arith.constant 0 : i32
    return %c0_i32, %arg1 : i32, i32
  }
  func.func @transform_4(%arg0: i32, %arg1: i32) -> (i32, i32) {
    %c0_i32 = arith.constant 0 : i32
    %c0_i32_0 = arith.constant 0 : i32
    return %arg1, %c0_i32 : i32, i32
  }
  func.func @transform_5(%arg0: i32, %arg1: i32) -> (i32, i32) {
    %c0_i32 = arith.constant 0 : i32
    %c0_i32_0 = arith.constant 0 : i32
    %c0_i32_1 = arith.constant 0 : i32
    return %c0_i32, %c0_i32_0 : i32, i32
  }
  func.func @transform_6(%arg0: i32, %arg1: i32) -> (i32, i32) {
    %c0_i32 = arith.constant 0 : i32
    %c0_i32_0 = arith.constant 0 : i32
    return %arg0, %c0_i32 : i32, i32
  }
}

</mosaic_0001>

<bundles_post_ra>
// kernel: tpu_custom_call.1
= control target key start
LH: loop header
LB: loop body
LE: loop exit
PB: predicated region body
PF: predicated region fallthrough
CT: control target
= control target key end

     0   :  { %11 = vsyncpa [#allocation5], 0  ;;  %s2685_s0 = inlined_call_operand.hbm [shape: bf16[4,128], index: 0, kind: input, shape index: {}]   ;;  %s2686_s1 = inlined_call_operand.vmem [shape: f32[1,128], index: 1, kind: input, shape index: {}]   ;;  %s2687_s2 = inlined_call_operand.hbm [shape: bf16[128,128], index: 2, kind: input, shape index: {}]   ;;  %s2688_s3 = inlined_call_operand.hbm [shape: bf16[128,128], index: 3, kind: input, shape index: {}]   ;;  %s2689_s4 = inlined_call_operand.hbm [shape: bf16[128,128], index: 4, kind: input, shape index: {}]   ;;  %s2690_s5 = inlined_call_operand.vmem [shape: f32[1,128], index: 5, kind: input, shape index: {}]   ;;  %s2691_s6 = inlined_call_operand.hbm [shape: f32[4,128], index: 6, kind: output, shape index: {}]  }
   0x1   :  { %12 = vsyncpa [#allocation8], 0 }
   0x2   :  { %13 = vsyncpa [#allocation11], 0 }
   0x3   :  { %14 = vsyncpa [#allocation6], 0 }
   0x4   :  { %19 = vsyncadd [#allocation5], 992  ;;  %s2114_s21 = smov [#allocation7]   ;;  %s1996_s25 = scalar_lea.hbm %s2687_s2, 1024 }
   0x5   :  { %s34_s22 = sshll.u32 %s2114_s21, 4  ;;  %p1997_p0 = scmp.ne.s32.totalorder %s2687_s2, %s1996_s25  ;;  %s35_s22 = int_to_ptr.vmem [resolvable:$true] %s34_s22 }
   0x6   :  { %p2000_p1 = scmp.lt.u32.totalorder %s1996_s25, %s2687_s2 }
   0x8   :  { %p2002_p2 = pnand %p2000_p1, %p1997_p0 }
   0xa   :  { %2005 = shalt.err (!%p2002_p2)
}
   0xb   :  { %s2006_s30 = scalar_lea.vmem %s35_s22, 1024  ;;  %p2011_p4 = scmp.lt.s32.totalorder %s35_s22, %s35_s22 }
   0xc   :  { %p2007_p3 = scmp.ne.s32.totalorder %s35_s22, %s2006_s30  ;;  %p2012_p5 = scmp.lt.s32.totalorder %s2006_s30, %s2006_s30 }
   0xe   :  { %p2013_p6 = por %p2012_p5, %p2011_p4 }
  0x10   :  { %p2014_p7 = pnand %p2013_p6, %p2007_p3 }
  0x12   :  { %2017 = shalt.err (!%p2014_p7)
}
  0x13   :  { %s2115_s7 = smov 64   ;;  %s2116_s8 = smov 4  }
  0x14   :  { %40 = dma.hbm_to_vmem [thread:$0]  %s2687_s2, 1024, %s35_s22, [#allocation8], %s2115_s7, %s2115_s7, %s2116_s8  }
  0x15   :  { %s2117_s11 = smov [#allocation4]   ;;  %s2018_s15 = scalar_lea.hbm %s2685_s0, 32 }
  0x16   :  { %s20_s12 = sshll.u32 %s2117_s11, 4  ;;  %p2019_p8 = scmp.ne.s32.totalorder %s2685_s0, %s2018_s15  ;;  %s21_s12 = int_to_ptr.vmem [resolvable:$true] %s20_s12 }
  0x17   :  { %p2022_p9 = scmp.lt.u32.totalorder %s2018_s15, %s2685_s0 }
  0x19   :  { %p2024_p10 = pnand %p2022_p9, %p2019_p8 }
  0x1b   :  { %2027 = shalt.err (!%p2024_p10)
}
  0x1c   :  { %s2028_s20 = scalar_lea.vmem %s21_s12, 32  ;;  %s2032_s2 = scalar_lea.vmem %s21_s12, 1024 }
  0x1d   :  { %p2029_p11 = scmp.ne.s32.totalorder %s21_s12, %s2028_s20  ;;  %p2033_p12 = scmp.lt.s32.totalorder %s21_s12, %s21_s12 }
  0x1e   :  { %p2034_p13 = scmp.lt.s32.totalorder %s2032_s2, %s2028_s20 }
  0x20   :  { %p2035_p0 = por %p2034_p13, %p2033_p12 }
  0x22   :  { %p2036_p1 = pnand %p2035_p0, %p2029_p11 }
  0x24   :  { %2039 = shalt.err (!%p2036_p1)
}
  0x25   :  { %s2118_s21 = smov 32   ;;  %s2119_s22 = smov 2  }
  0x26   :  { %26 = dma.hbm_to_vmem [thread:$0]  %s2685_s0, 32, %s21_s12, [#allocation5], %s2118_s21, %s2118_s21, %s2119_s22  }
  0x27   :  { %s2120_s25 = smov [#allocation9]   ;;  %s2121_s27 = smov [#allocation10]  }
  0x28   :  { %s46_s26 = sshll.u32 %s2120_s25, 4  ;;  %s58_s28 = sshll.u32 %s2121_s27, 4  ;;  %s47_s26 = int_to_ptr.vmem [resolvable:$true] %s46_s26  ;;  %s2187_s28 = int_to_ptr.vmem [resolvable:$true] %s58_s28 }
  0x29   :  { %s2040_s9 = scalar_lea.hbm %s2688_s3, 1024 }
  0x2a   :  { %p2041_p2 = scmp.ne.s32.totalorder %s2688_s3, %s2040_s9  ;;  %p2044_p3 = scmp.lt.u32.totalorder %s2040_s9, %s2688_s3 }
  0x2c   :  { %p2046_p4 = pnand %p2044_p3, %p2041_p2 }
  0x2e   :  { %2049 = shalt.err (!%p2046_p4)
}
  0x2f   :  { %s2050_s0 = scalar_lea.vmem %s47_s26, 1024  ;;  %p2055_p6 = scmp.lt.s32.totalorder %s47_s26, %s47_s26 }
  0x30   :  { %p2051_p5 = scmp.ne.s32.totalorder %s47_s26, %s2050_s0  ;;  %p2056_p7 = scmp.lt.s32.totalorder %s2050_s0, %s2050_s0 }
  0x32   :  { %p2057_p8 = por %p2056_p7, %p2055_p6 }
  0x34   :  { %p2058_p9 = pnand %p2057_p8, %p2051_p5 }
  0x36   :  { %2061 = shalt.err (!%p2058_p9)
}
  0x37   :  { %52 = dma.hbm_to_vmem [thread:$0]  %s2688_s3, 1024, %s47_s26, [#allocation8], %s2115_s7, %s2115_s7, %s2116_s8  }
  0x38   :  { %s2062_s18 = scalar_lea.hbm %s2689_s4, 1024 }
  0x39   :  { %p2063_p10 = scmp.ne.s32.totalorder %s2689_s4, %s2062_s18  ;;  %p2066_p11 = scmp.lt.u32.totalorder %s2062_s18, %s2689_s4 }
  0x3b   :  { %p2068_p12 = pnand %p2066_p11, %p2063_p10 }
  0x3d   :  { %2071 = shalt.err (!%p2068_p12)
}
  0x3e   :  { %s2072_s22 = scalar_lea.vmem %s2187_s28, 1024  ;;  %p2077_p0 = scmp.lt.s32.totalorder %s2187_s28, %s2187_s28 }
  0x3f   :  { %p2073_p13 = scmp.ne.s32.totalorder %s2187_s28, %s2072_s22  ;;  %p2078_p1 = scmp.lt.s32.totalorder %s2072_s22, %s2072_s22 }
  0x41   :  { %p2079_p2 = por %p2078_p1, %p2077_p0 }
  0x43   :  { %p2080_p3 = pnand %p2079_p2, %p2073_p13 }
  0x45   :  { %2083 = shalt.err (!%p2080_p3)
}
  0x46   :  { %64 = dma.hbm_to_vmem [thread:$0]  %s2689_s4, 1024, %s2187_s28, [#allocation11], %s2115_s7, %s2115_s7, %s2116_s8  }
  0x47   :  { %2106 = dma.done.wait [#allocation5], 1024  }
  0x48   :  { %2107 = vsyncadd [#allocation5], 4294966272 }
  0x49   :  { %2108 = dma.done.wait [#allocation8], 2048  }
  0x4a   :  { %2109 = vsyncadd [#allocation8], 4294965248 }
  0x4b   :  { %2110 = dma.done.wait [#allocation11], 1024  }
  0x4c   :  { %2111 = vsyncadd [#allocation11], 4294966272  ;;  %v88_v0 = vld [vmem:[#allocation4 + $0x8] sm:$0x3]  ;;  %v89_v1 = vld [vmem:[#allocation4 + $0xa] sm:$0x3] }
  0x4d   :  { %v84_v2 = vld [vmem:[#allocation4] sm:$0x3]  ;;  %v2224_v3 = vunpack.c.l.bf16 %v88_v0  ;;  %v2226_v4 = vunpack.c.l.bf16 %v89_v1  ;;  %v85_v5 = vld [vmem:[#allocation4 + $0x2] sm:$0x3]  ;;  %v90_v7 = vld [vmem:[#allocation4 + $0xc] sm:$0x3] }
  0x4e   :  { %v2228_v6 = vunpack.c.l.bf16 %v84_v2  ;;  %v91_v8 = vld [vmem:[#allocation4 + $0xe] sm:$0x3]  ;;  %v2230_v9 = vunpack.c.l.bf16 %v85_v5  ;;  %v2232_v10 = vunpack.c.l.bf16 %v90_v7  ;;  %v86_v12 = vld [vmem:[#allocation4 + $0x4] sm:$0x3]  ;;  %v87_v13 = vld [vmem:[#allocation4 + $0x6] sm:$0x3] }
  0x4f   :  { %v2234_v11 = vunpack.c.l.bf16 %v91_v8  ;;  %v94_v14 = vld [vmem:[#allocation4 + $0x14] sm:$0x3]  ;;  %v152_v15 = vmul.f32 %v2224_v3, %v2224_v3  ;;  %v153_v16 = vmul.f32 %v2226_v4, %v2226_v4  ;;  %v2242_v18 = vunpack.c.l.bf16 %v86_v12  ;;  %v95_v19 = vld [vmem:[#allocation4 + $0x16] sm:$0x3]  ;;  %v92_v20 = vld [vmem:[#allocation4 + $0x10] sm:$0x3] }
  0x50   :  { %v148_v17 = vmul.f32 %v2228_v6, %v2228_v6  ;;  %v149_v21 = vmul.f32 %v2230_v9, %v2230_v9  ;;  %v154_v22 = vmul.f32 %v2232_v10, %v2232_v10  ;;  %v2250_v24 = vunpack.c.l.bf16 %v87_v13  ;;  %v93_v25 = vld [vmem:[#allocation4 + $0x12] sm:$0x3]  ;;  %v98_v26 = vld [vmem:[#allocation4 + $0x1c] sm:$0x3]  ;;  %v99_v31 = vld [vmem:[#allocation4 + $0x1e] sm:$0x3] }
  0x51   :  { %v155_v23 = vmul.f32 %v2234_v11, %v2234_v11  ;;  %v214_v27 = vcombine.low %v152_v15, %v153_v16  ;;  %v150_v28 = vmul.f32 %v2242_v18, %v2242_v18  ;;  %v2254_v29 = vunpack.c.l.bf16 %v94_v14  ;;  %v96_v32 = vld [vmem:[#allocation4 + $0x18] sm:$0x3]  ;;  %v97_v37 = vld [vmem:[#allocation4 + $0x1a] sm:$0x3]  ;;  %v102_v46 = vld [vmem:[#allocation4 + $0x24] sm:$0x3] }
  0x52   :  { %v2256_v30 = vunpack.c.l.bf16 %v95_v19  ;;  %v212_v33 = vcombine.low %v148_v17, %v149_v21  ;;  %v151_v35 = vmul.f32 %v2250_v24, %v2250_v24  ;;  %v2260_v36 = vunpack.c.l.bf16 %v92_v20  ;;  %v103_v47 = vld [vmem:[#allocation4 + $0x26] sm:$0x3]  ;;  %v100_v48 = vld [vmem:[#allocation4 + $0x20] sm:$0x3]  ;;  %v101_v51 = vld [vmem:[#allocation4 + $0x22] sm:$0x3] }
  0x53   :  { %v215_v34 = vcombine.low %v154_v22, %v155_v23  ;;  %248 = vadd.xlane.f32.xlu1 %v214_v27  ;;  %v158_v38 = vmul.f32 %v2254_v29, %v2254_v29  ;;  %v2266_v40 = vunpack.c.l.bf16 %v93_v25  ;;  %v2268_v41 = vunpack.c.l.bf16 %v98_v26  ;;  %v106_v52 = vld [vmem:[#allocation4 + $0x2c] sm:$0x3]  ;;  %v107_v53 = vld [vmem:[#allocation4 + $0x2e] sm:$0x3]  ;;  %v104_v56 = vld [vmem:[#allocation4 + $0x28] sm:$0x3] }
  0x54   :  { %v159_v39 = vmul.f32 %v2256_v30, %v2256_v30  ;;  %244 = vadd.xlane.f32.xlu0 %v212_v33  ;;  %v213_v42 = vcombine.low %v150_v28, %v151_v35  ;;  %v156_v43 = vmul.f32 %v2260_v36, %v2260_v36  ;;  %v2272_v44 = vunpack.c.l.bf16 %v99_v31  ;;  %v105_v57 = vld [vmem:[#allocation4 + $0x2a] sm:$0x3]  ;;  %v1844_v62 = vld [vmem:[#allocation7] sm:$0xff]   ;;  %v110_v7 = vld [vmem:[#allocation4 + $0x34] sm:$0x3] }
  0x55   :  { %v2274_v45 = vunpack.c.l.bf16 %v96_v32  ;;  %v157_v49 = vmul.f32 %v2266_v40, %v2266_v40  ;;  %v2278_v50 = vunpack.c.l.bf16 %v97_v37  ;;  %v162_v54 = vmul.f32 %v2268_v41, %v2268_v41  ;;  %v1845_v5 = vld [vmem:[#allocation9] sm:$0xff]   ;;  %1721 = vmatprep.subr.bf16.mxu0 %v1844_v62  ;;  %v111_v14 = vld [vmem:[#allocation4 + $0x36] sm:$0x3]  ;;  %v108_v20 = vld [vmem:[#allocation4 + $0x30] sm:$0x3] }
  0x56   :  { %v163_v55 = vmul.f32 %v2272_v44, %v2272_v44  ;;  %v217_v58 = vcombine.low %v158_v38, %v159_v39  ;;  %v2286_v60 = vunpack.c.l.bf16 %v102_v46  ;;  %v2288_v61 = vunpack.c.l.bf16 %v103_v47  ;;  %1753 = vmatprep.subr.bf16.mxu1 %v1845_v5  ;;  %1722 = vmatpush3.bf16.msra.mxu0 %v1844_v62  ;;  %v109_v21 = vld [vmem:[#allocation4 + $0x32] sm:$0x3]  ;;  %v114_v31 = vld [vmem:[#allocation4 + $0x3c] sm:$0x3]  ;;  %v115_v32 = vld [vmem:[#allocation4 + $0x3e] sm:$0x3] }
  0x57   :  { %250 = vadd.xlane.f32.xlu1 %v215_v34  ;;  %v160_v59 = vmul.f32 %v2274_v45, %v2274_v45  ;;  %v216_v63 = vcombine.low %v156_v43, %v157_v49  ;;  %v161_v0 = vmul.f32 %v2278_v50, %v2278_v50  ;;  %v2292_v1 = vunpack.c.l.bf16 %v100_v48  ;;  %1754 = vmatpush3.bf16.msra.mxu1 %v1845_v5  ;;  %v112_v38 = vld [vmem:[#allocation4 + $0x38] sm:$0x3]  ;;  %v113_v39 = vld [vmem:[#allocation4 + $0x3a] sm:$0x3]  ;;  %v1846_v49 = vld [vmem:[#allocation7 + $0x8] sm:$0xff]  }
  0x58   :  { %246 = vadd.xlane.f32.xlu0 %v213_v42  ;;  %v2294_v2 = vunpack.c.l.bf16 %v101_v51  ;;  %v219_v8 = vcombine.low %v162_v54, %v163_v55  ;;  %v2296_v12 = vunpack.c.l.bf16 %v106_v52  ;;  %v2298_v13 = vunpack.c.l.bf16 %v107_v53  ;;  %v1847_v51 = vld [vmem:[#allocation9 + $0x8] sm:$0xff]   ;;  %1723 = vmatprep.subr.bf16.mxu0 %v1846_v49  ;;  %v1848_v62 = vld [vmem:[#allocation7 + $0x10] sm:$0xff]  }
  0x59   :  { %v166_v15 = vmul.f32 %v2286_v60, %v2286_v60  ;;  %v167_v16 = vmul.f32 %v2288_v61, %v2288_v61  ;;  %v2304_v17 = vunpack.c.l.bf16 %v104_v56  ;;  %v2306_v19 = vunpack.c.l.bf16 %v105_v57  ;;  %1755 = vmatprep.subr.bf16.mxu1 %v1847_v51 }
  0x5a   :  { %v218_v22 = vcombine.low %v160_v59, %v161_v0  ;;  %v164_v23 = vmul.f32 %v2292_v1, %v2292_v1  ;;  %v165_v25 = vmul.f32 %v2294_v2, %v2294_v2  ;;  %v170_v26 = vmul.f32 %v2296_v12, %v2296_v12  ;;  %1724 = vmatpush3.bf16.msra.mxu0 %v1846_v49 }
  0x5b   :  { %254 = vadd.xlane.f32.xlu1 %v217_v58  ;;  %v171_v27 = vmul.f32 %v2298_v13, %v2298_v13  ;;  %v2316_v28 = vunpack.c.l.bf16 %v110_v7  ;;  %v221_v33 = vcombine.low %v166_v15, %v167_v16  ;;  %v168_v34 = vmul.f32 %v2304_v17, %v2304_v17  ;;  %1756 = vmatpush3.bf16.msra.mxu1 %v1847_v51  ;;  %v1850_v16 = vld [vmem:[#allocation7 + $0x18] sm:$0xff]  }
  0x5c   :  { %252 = vadd.xlane.f32.xlu0 %v216_v63  ;;  %v169_v35 = vmul.f32 %v2306_v19, %v2306_v19  ;;  %v2322_v37 = vunpack.c.l.bf16 %v111_v14  ;;  %v220_v42 = vcombine.low %v164_v23, %v165_v25  ;;  %v2324_v43 = vunpack.c.l.bf16 %v108_v20  ;;  %v1849_v63 = vld [vmem:[#allocation9 + $0x10] sm:$0xff]   ;;  %1725 = vmatprep.subr.bf16.mxu0 %v1848_v62  ;;  %v1851_v20 = vld [vmem:[#allocation9 + $0x18] sm:$0xff]   ;;  %v1852_v23 = vld [vmem:[#allocation7 + $0x20] sm:$0xff]  }
  0x5d   :  { %v2326_v46 = vunpack.c.l.bf16 %v109_v21  ;;  %v223_v47 = vcombine.low %v170_v26, %v171_v27  ;;  %v174_v48 = vmul.f32 %v2316_v28, %v2316_v28  ;;  %v2332_v54 = vunpack.c.l.bf16 %v114_v31  ;;  %1757 = vmatprep.subr.bf16.mxu1 %v1849_v63  ;;  %v1853_v25 = vld [vmem:[#allocation9 + $0x20] sm:$0xff]   ;;  %v1854_v26 = vld [vmem:[#allocation7 + $0x28] sm:$0xff]   ;;  %v1856_v31 = vld [vmem:[#allocation7 + $0x30] sm:$0xff]  }
  0x5e   :  { %v222_v52 = vcombine.low %v168_v34, %v169_v35  ;;  %v175_v53 = vmul.f32 %v2322_v37, %v2322_v37  ;;  %v2334_v55 = vunpack.c.l.bf16 %v115_v32  ;;  %v172_v56 = vmul.f32 %v2324_v43, %v2324_v43  ;;  %1726 = vmatpush3.bf16.msra.mxu0 %v1848_v62  ;;  %v1855_v27 = vld [vmem:[#allocation9 + $0x28] sm:$0xff]   ;;  %v1857_v32 = vld [vmem:[#allocation9 + $0x30] sm:$0xff]   ;;  %v1859_v34 = vld [vmem:[#allocation9 + $0x38] sm:$0xff]  }
  0x5f   :  { %258 = vadd.xlane.f32.xlu1 %v219_v8  ;;  %v173_v57 = vmul.f32 %v2326_v46, %v2326_v46  ;;  %v2340_v58 = vunpack.c.l.bf16 %v112_v38  ;;  %v2342_v59 = vunpack.c.l.bf16 %v113_v39  ;;  %v178_v5 = vmul.f32 %v2332_v54, %v2332_v54  ;;  %1758 = vmatpush3.bf16.msra.mxu1 %v1849_v63 }
  0x60   :  { %256 = vadd.xlane.f32.xlu0 %v218_v22  ;;  %v225_v0 = vcombine.low %v174_v48, %v175_v53  ;;  %v179_v7 = vmul.f32 %v2334_v55, %v2334_v55  ;;  %1727 = vmatprep.subr.bf16.mxu0 %v1850_v16  ;;  %v2122_v51 = vmov 839922192   ;;  %v344_v53 = vlaneseq }
  0x61   :  { %v224_v8 = vcombine.low %v172_v56, %v173_v57  ;;  %v176_v14 = vmul.f32 %v2340_v58, %v2340_v58  ;;  %v177_v15 = vmul.f32 %v2342_v59, %v2342_v59  ;;  %1759 = vmatprep.subr.bf16.mxu1 %v1851_v20  ;;  %v2123_v56 = vmov 1985246804  }
  0x62   :  { %v227_v21 = vcombine.low %v178_v5, %v179_v7  ;;  %1728 = vmatpush3.bf16.msra.mxu0 %v1850_v16  ;;  %v349_v57 = vunpack.c.l.s4 %v2123_v56 }
  0x63   :  { %262 = vadd.xlane.f32.xlu1 %v221_v33  ;;  %v226_v22 = vcombine.low %v176_v14, %v177_v15  ;;  %1760 = vmatpush3.bf16.msra.mxu1 %v1851_v20  ;;  %v1858_v33 = vld [vmem:[#allocation7 + $0x38] sm:$0xff]   ;;  %v345_v15 = vshrl.u32 %v344_v53, 7 }
  0x64   :  { %260 = vadd.xlane.f32.xlu0 %v220_v42  ;;  %1729 = vmatprep.subr.bf16.mxu0 %v1852_v23  ;;  %v350_v16 = vunpack.c.0.s8 %v349_v57 }
  0x65   :  { %1761 = vmatprep.subr.bf16.mxu1 %v1853_v25 }
  0x66   :  { %1730 = vmatpush3.bf16.msra.mxu0 %v1852_v23 }
  0x67   :  { %266 = vadd.xlane.f32.xlu1 %v223_v47  ;;  %1762 = vmatpush3.bf16.msra.mxu1 %v1853_v25 }
  0x68   :  { %264 = vadd.xlane.f32.xlu0 %v222_v52  ;;  %1731 = vmatprep.subr.bf16.mxu0 %v1854_v26  ;;  %v342_v52 = vunpack.c.l.s4 %v2122_v51 }
  0x69   :  { %1763 = vmatprep.subr.bf16.mxu1 %v1855_v27 }
  0x6a   :  { %1732 = vmatpush3.bf16.msra.mxu0 %v1854_v26  ;;  %v343_v14 = vunpack.c.0.s8 %v342_v52 }
  0x6b   :  { %270 = vadd.xlane.f32.xlu1 %v225_v0  ;;  %1764 = vmatpush3.bf16.msra.mxu1 %v1855_v27 }
  0x6c   :  { %268 = vadd.xlane.f32.xlu0 %v224_v8  ;;  %1733 = vmatprep.subr.bf16.mxu0 %v1856_v31  ;;  %v2352_v27 = vsub.s32 %v343_v14, %v345_v15 }
  0x6d   :  { %1765 = vmatprep.subr.bf16.mxu1 %v1857_v32 }
  0x6e   :  { %1734 = vmatpush3.bf16.msra.mxu0 %v1856_v31  ;;  %v2354_v31 = vsub.s32 %v350_v16, %v345_v15 }
  0x6f   :  { %274 = vadd.xlane.f32.xlu1 %v227_v21  ;;  %1766 = vmatpush3.bf16.msra.mxu1 %v1857_v32 }
  0x70   :  { %272 = vadd.xlane.f32.xlu0 %v226_v22  ;;  %1735 = vmatprep.subr.bf16.mxu0 %v1858_v33 }
  0x71   :  { %1767 = vmatprep.subr.bf16.mxu1 %v1859_v34 }
  0x72   :  { %1736 = vmatpush3.bf16.msra.mxu0 %v1858_v33 }
  0x73   :  { %1768 = vmatpush3.bf16.msra.mxu1 %v1859_v34 }
  0xe0   :  { %v249_v35 = vpop.xlane.xlu1 %248 }
  0xe1   :  { %v279_v38 = vmul.f32 0.0078125, %v249_v35  ;;  %v245_v39 = vpop.xlane.xlu0 %244 }
  0xe2   :  { %v277_v42 = vmul.f32 0.0078125, %v245_v39  ;;  %v2359_v39 = vld [vmem:[%s2686_s1] ss:$0 sm:$0xff] }
  0xe3   :  { %v295_v47 = vadd.f32 1e-06, %v279_v38 }
  0xe4   :  { %v293_v48 = vadd.f32 1e-06, %v277_v42  ;;  %v251_v49 = vpop.xlane.xlu1 %250 }
  0xe5   :  { %1868 = vrsqrt.f32 %v295_v47  ;;  %v280_v62 = vmul.f32 0.0078125, %v251_v49  ;;  %v247_v63 = vpop.xlane.xlu0 %246 }
  0xe6   :  { %1870 = vrsqrt.f32 %v293_v48  ;;  %v278_v0 = vmul.f32 0.0078125, %v247_v63  ;;  %v2367_v63 = vcombine.high %v2359_v39, %v2359_v39 }
  0xe7   :  { %v296_v5 = vadd.f32 1e-06, %v280_v62 }
  0xe8   :  { %v294_v7 = vadd.f32 1e-06, %v278_v0  ;;  %v255_v8 = vpop.xlane.xlu1 %254 }
  0xe9   :  { %1872 = vrsqrt.f32 %v296_v5  ;;  %v282_v20 = vmul.f32 0.0078125, %v255_v8  ;;  %v253_v21 = vpop.xlane.xlu0 %252 }
  0xea   :  { %1874 = vrsqrt.f32 %v294_v7  ;;  %v281_v22 = vmul.f32 0.0078125, %v253_v21 }
  0xeb   :  { %v298_v23 = vadd.f32 1e-06, %v282_v20 }
  0xec   :  { %v297_v25 = vadd.f32 1e-06, %v281_v22  ;;  %v259_v26 = vpop.xlane.xlu1 %258 }
  0xed   :  { %v284_v32 = vmul.f32 0.0078125, %v259_v26  ;;  %v257_v33 = vpop.xlane.xlu0 %256 }
  0xee   :  { %1876 = vrsqrt.f32 %v297_v25  ;;  %v283_v34 = vmul.f32 0.0078125, %v257_v33 }
  0xef   :  { %v1869_v35 = vpop.eup %1868  ;;  %1878 = vrsqrt.f32 %v298_v23  ;;  %v300_v38 = vadd.f32 1e-06, %v284_v32 }
  0xf0   :  { %v1871_v42 = vpop.eup %1870  ;;  %v299_v47 = vadd.f32 1e-06, %v283_v34  ;;  %v263_v48 = vpop.xlane.xlu1 %262  ;;  %v375_v49 = vrot.slane %v1869_v35, %v2352_v27  ;;  %v382_v51 = vrot.slane %v1869_v35, %v2354_v31 }
  0xf1   :  { %1880 = vrsqrt.f32 %v300_v38  ;;  %v286_v52 = vmul.f32 0.0078125, %v263_v48  ;;  %v261_v53 = vpop.xlane.xlu0 %260  ;;  %v347_v56 = vrot.slane %v1871_v42, %v2352_v27  ;;  %v354_v57 = vrot.slane %v1871_v42, %v2354_v31 }
  0xf2   :  { %1882 = vrsqrt.f32 %v299_v47  ;;  %v285_v62 = vmul.f32 0.0078125, %v261_v53  ;;  %v601_v0 = vmul.f32 %v375_v49, %v2224_v3  ;;  %v602_v15 = vmul.f32 %v382_v51, %v2226_v4 }
  0xf3   :  { %v1873_v5 = vpop.eup %1872  ;;  %v302_v7 = vadd.f32 1e-06, %v286_v52  ;;  %v597_v8 = vmul.f32 %v347_v56, %v2228_v6  ;;  %v598_v14 = vmul.f32 %v354_v57, %v2230_v9 }
  0xf4   :  { %v1875_v16 = vpop.eup %1874  ;;  %v301_v20 = vadd.f32 1e-06, %v285_v62  ;;  %v267_v21 = vpop.xlane.xlu1 %266  ;;  %v389_v22 = vrot.slane %v1873_v5, %v2352_v27  ;;  %v396_v23 = vrot.slane %v1873_v5, %v2354_v31  ;;  %v642_v25 = vmul.f32 %v2359_v39, %v601_v0 }
  0xf5   :  { %1884 = vrsqrt.f32 %v302_v7  ;;  %v288_v26 = vmul.f32 0.0078125, %v267_v21  ;;  %v265_v3 = vpop.xlane.xlu0 %264  ;;  %v361_v32 = vrot.slane %v1875_v16, %v2352_v27  ;;  %v368_v6 = vrot.slane %v1875_v16, %v2354_v31 }
  0xf6   :  { %1886 = vrsqrt.f32 %v301_v20  ;;  %v287_v9 = vmul.f32 0.0078125, %v265_v3  ;;  %v638_v4 = vmul.f32 %v2359_v39, %v597_v8  ;;  %v639_v33 = vmul.f32 %v2367_v63, %v598_v14 }
  0xf7   :  { %v304_v34 = vadd.f32 1e-06, %v288_v26  ;;  %v599_v35 = vmul.f32 %v361_v32, %v2242_v18  ;;  %v600_v38 = vmul.f32 %v368_v6, %v2250_v24  ;;  %v603_v42 = vmul.f32 %v389_v22, %v2232_v10 }
  0xf8   :  { %v1877_v47 = vpop.eup %1876  ;;  %v303_v48 = vadd.f32 1e-06, %v287_v9  ;;  %v271_v49 = vpop.xlane.xlu1 %270  ;;  %v702_v51 = vcombine.low %v638_v4, %v639_v33  ;;  %v604_v52 = vmul.f32 %v396_v23, %v2234_v11  ;;  %v643_v53 = vmul.f32 %v2367_v63, %v602_v15 }
  0xf9   :  { %v1879_v56 = vpop.eup %1878  ;;  %1888 = vrsqrt.f32 %v304_v34  ;;  %v290_v57 = vmul.f32 0.0078125, %v271_v49  ;;  %v269_v62 = vpop.xlane.xlu0 %268  ;;  %v640_v0 = vmul.f32 %v2359_v39, %v599_v35  ;;  %v641_v18 = vmul.f32 %v2367_v63, %v600_v38 }
  0xfa   :  { %1890 = vrsqrt.f32 %v303_v48  ;;  %v289_v24 = vmul.f32 0.0078125, %v269_v62  ;;  %v644_v10 = vmul.f32 %v2359_v39, %v603_v42  ;;  %v645_v5 = vmul.f32 %v2367_v63, %v604_v52 }
  0xfb   :  { %v1881_v7 = vpop.eup %1880  ;;  %v306_v8 = vadd.f32 1e-06, %v290_v57  ;;  %v703_v14 = vcombine.low %v640_v0, %v641_v18  ;;  %v704_v11 = vcombine.low %v642_v25, %v643_v53  ;;  %v403_v15 = vrot.slane %v1877_v47, %v2352_v27 }
  0xfc   :  { %v1883_v16 = vpop.eup %1882  ;;  %v305_v20 = vadd.f32 1e-06, %v289_v24  ;;  %v275_v21 = vpop.xlane.xlu1 %274  ;;  %v705_v22 = vcombine.low %v644_v10, %v645_v5  ;;  %v410_v23 = vrot.slane %v1877_v47, %v2354_v31  ;;  %v417_v26 = vrot.slane %v1879_v56, %v2352_v27 }
  0xfd   :  { %1892 = vrsqrt.f32 %v306_v8  ;;  %v292_v3 = vmul.f32 0.0078125, %v275_v21  ;;  %v273_v32 = vpop.xlane.xlu0 %272  ;;  %v734_v6 = vpack.c.bf16 %v703_v14, %v702_v51  ;;  %v424_v9 = vrot.slane %v1879_v56, %v2354_v31 }
  0xfe   :  { %1894 = vrsqrt.f32 %v305_v20  ;;  %v291_v4 = vmul.f32 0.0078125, %v273_v32  ;;  %v735_v33 = vpack.c.bf16 %v705_v22, %v704_v11  ;;  %v605_v25 = vmul.f32 %v403_v15, %v2260_v36 }
  0xff   :  { %v1885_v34 = vpop.eup %1884  ;;  %v308_v35 = vadd.f32 1e-06, %v292_v3  ;;  %1737 = vmatprep.mubr.bf16.mxu0 %v734_v6  ;;  %1769 = vmatprep.mubr.bf16.mxu1 %v734_v6  ;;  %v606_v38 = vmul.f32 %v410_v23, %v2266_v40  ;;  %v607_v42 = vmul.f32 %v417_v26, %v2254_v29  ;;  %v608_v47 = vmul.f32 %v424_v9, %v2256_v30 }
 0x100   :  { %v1887_v48 = vpop.eup %1886  ;;  %v307_v49 = vadd.f32 1e-06, %v291_v4  ;;  %1738 = vmatmul.mubr.bf16.vlgmr.msra.gmra.mrb[0].mxu0 %v735_v33  ;;  %1770 = vmatmul.mubr.bf16.vlgmr.msra.gmra.mrb[0].mxu1 %v735_v33  ;;  %v646_v51 = vmul.f32 %v2359_v39, %v605_v25  ;;  %v431_v52 = vrot.slane %v1883_v16, %v2352_v27  ;;  %v438_v36 = vrot.slane %v1883_v16, %v2354_v31 }
 0x101   :  { %1896 = vrsqrt.f32 %v308_v35  ;;  %v647_v53 = vmul.f32 %v2367_v63, %v606_v38  ;;  %v648_v56 = vmul.f32 %v2359_v39, %v607_v42  ;;  %v649_v40 = vmul.f32 %v2367_v63, %v608_v47 }
 0x102   :  { %1898 = vrsqrt.f32 %v307_v49  ;;  %v445_v29 = vrot.slane %v1881_v7, %v2352_v27  ;;  %v452_v30 = vrot.slane %v1881_v7, %v2354_v31  ;;  %v609_v57 = vmul.f32 %v431_v52, %v2274_v45 }
 0x103   :  { %v1889_v62 = vpop.eup %1888  ;;  %v706_v0 = vcombine.low %v646_v51, %v647_v53  ;;  %v707_v18 = vcombine.low %v648_v56, %v649_v40  ;;  %v610_v24 = vmul.f32 %v438_v36, %v2278_v50  ;;  %v459_v10 = vrot.slane %v1887_v48, %v2352_v27 }
 0x104   :  { %v1891_v5 = vpop.eup %1890  ;;  %v611_v8 = vmul.f32 %v445_v29, %v2268_v41  ;;  %v612_v14 = vmul.f32 %v452_v30, %v2272_v44  ;;  %v650_v11 = vmul.f32 %v2359_v39, %v609_v57  ;;  %v466_v15 = vrot.slane %v1887_v48, %v2354_v31 }
 0x105   :  { %v736_v16 = vpack.c.bf16 %v707_v18, %v706_v0  ;;  %v651_v7 = vmul.f32 %v2367_v63, %v610_v24  ;;  %v473_v45 = vrot.slane %v1885_v34, %v2352_v27  ;;  %v480_v20 = vrot.slane %v1885_v34, %v2354_v31 }
 0x106   :  { %v652_v50 = vmul.f32 %v2359_v39, %v611_v8  ;;  %v653_v21 = vmul.f32 %v2367_v63, %v612_v14  ;;  %v613_v22 = vmul.f32 %v459_v10, %v2292_v1  ;;  %v614_v41 = vmul.f32 %v466_v15, %v2294_v2 }
 0x107   :  { %v1893_v44 = vpop.eup %1892  ;;  %1741 = vmatprep.mubr.bf16.mxu0 %v736_v16  ;;  %1773 = vmatprep.mubr.bf16.mxu1 %v736_v16  ;;  %v708_v23 = vcombine.low %v650_v11, %v651_v7  ;;  %v615_v26 = vmul.f32 %v473_v45, %v2286_v60  ;;  %v616_v3 = vmul.f32 %v480_v20, %v2288_v61 }
 0x108   :  { %v1895_v32 = vpop.eup %1894  ;;  %v709_v6 = vcombine.low %v652_v50, %v653_v21  ;;  %v654_v9 = vmul.f32 %v2359_v39, %v613_v22  ;;  %v655_v4 = vmul.f32 %v2367_v63, %v614_v41  ;;  %v487_v33 = vrot.slane %v1891_v5, %v2352_v27 }
 0x109   :  { %v656_v1 = vmul.f32 %v2359_v39, %v615_v26  ;;  %v657_v2 = vmul.f32 %v2367_v63, %v616_v3  ;;  %v494_v25 = vrot.slane %v1891_v5, %v2354_v31  ;;  %v501_v34 = vrot.slane %v1889_v62, %v2352_v27  ;;  %v1865_v26 = vld [vmem:[#allocation10 + $0x28] sm:$0xff]   ;;  %v1866_v3 = vld [vmem:[#allocation10 + $0x30] sm:$0xff]  }
 0x10a   :  { %v737_v35 = vpack.c.bf16 %v709_v6, %v708_v23  ;;  %v710_v60 = vcombine.low %v654_v9, %v655_v4  ;;  %v508_v61 = vrot.slane %v1889_v62, %v2354_v31  ;;  %v617_v38 = vmul.f32 %v487_v33, %v2304_v17  ;;  %v1864_v23 = vld [vmem:[#allocation10 + $0x20] sm:$0xff]  }
 0x10b   :  { %v1897_v42 = vpop.eup %1896  ;;  %v711_v47 = vcombine.low %v656_v1, %v657_v2  ;;  %v618_v48 = vmul.f32 %v494_v25, %v2306_v19  ;;  %v619_v49 = vmul.f32 %v501_v34, %v2296_v12  ;;  %v515_v51 = vrot.slane %v1895_v32, %v2352_v27 }
 0x10c   :  { %v1899_v52 = vpop.eup %1898  ;;  %1742 = vmatmul.mubr.bf16.gmra.mrb[4].mxu0 %v737_v35  ;;  %1774 = vmatmul.mubr.bf16.gmra.mrb[4].mxu1 %v737_v35  ;;  %v620_v36 = vmul.f32 %v508_v61, %v2298_v13  ;;  %v658_v53 = vmul.f32 %v2359_v39, %v617_v38  ;;  %v522_v56 = vrot.slane %v1895_v32, %v2354_v31  ;;  %v1867_v32 = vld [vmem:[#allocation10 + $0x38] sm:$0xff]  }
 0x10d   :  { %v738_v40 = vpack.c.bf16 %v711_v47, %v710_v60  ;;  %v659_v17 = vmul.f32 %v2367_v63, %v618_v48  ;;  %v660_v29 = vmul.f32 %v2359_v39, %v619_v49  ;;  %v529_v19 = vrot.slane %v1893_v44, %v2352_v27 }
 0x10e   :  { %v661_v12 = vmul.f32 %v2367_v63, %v620_v36  ;;  %v536_v30 = vrot.slane %v1893_v44, %v2354_v31  ;;  %v621_v57 = vmul.f32 %v515_v51, %v2324_v43  ;;  %v622_v62 = vmul.f32 %v522_v56, %v2326_v46 }
 0x10f   :  { %1745 = vmatprep.mubr.bf16.mxu0 %v738_v40  ;;  %1777 = vmatprep.mubr.bf16.mxu1 %v738_v40  ;;  %v712_v13 = vcombine.low %v658_v53, %v659_v17  ;;  %v623_v0 = vmul.f32 %v529_v19, %v2316_v28  ;;  %v543_v18 = vrot.slane %v1899_v52, %v2352_v27 }
 0x110   :  { %v713_v24 = vcombine.low %v660_v29, %v661_v12  ;;  %v624_v10 = vmul.f32 %v536_v30, %v2322_v37  ;;  %v662_v5 = vmul.f32 %v2359_v39, %v621_v57  ;;  %v663_v8 = vmul.f32 %v2367_v63, %v622_v62 }
 0x111   :  { %v664_v14 = vmul.f32 %v2359_v39, %v623_v0  ;;  %v550_v43 = vrot.slane %v1899_v52, %v2354_v31  ;;  %v557_v46 = vrot.slane %v1897_v42, %v2352_v27  ;;  %v564_v11 = vrot.slane %v1897_v42, %v2354_v31 }
 0x112   :  { %v739_v15 = vpack.c.bf16 %v713_v24, %v712_v13  ;;  %v665_v28 = vmul.f32 %v2367_v63, %v624_v10  ;;  %v714_v16 = vcombine.low %v662_v5, %v663_v8  ;;  %v625_v7 = vmul.f32 %v543_v18, %v2340_v58 }
 0x113   :  { %v626_v37 = vmul.f32 %v550_v43, %v2342_v59  ;;  %v627_v45 = vmul.f32 %v557_v46, %v2332_v54  ;;  %v628_v20 = vmul.f32 %v564_v11, %v2334_v55  ;;  %v1860_v54 = vld [vmem:[#allocation10] sm:$0xff]   ;;  %v1861_v55 = vld [vmem:[#allocation10 + $0x8] sm:$0xff]  }
 0x114   :  { %1746 = vmatmul.mubr.bf16.gmra.mrb[8].mxu0 %v739_v15  ;;  %1778 = vmatmul.mubr.bf16.gmra.mrb[8].mxu1 %v739_v15  ;;  %v715_v50 = vcombine.low %v664_v14, %v665_v28  ;;  %v666_v21 = vmul.f32 %v2359_v39, %v625_v7 }
 0x115   :  { %v667_v27 = vmul.f32 %v2367_v63, %v626_v37  ;;  %v668_v31 = vmul.f32 %v2359_v39, %v627_v45  ;;  %v669_v22 = vmul.f32 %v2367_v63, %v628_v20  ;;  %1785 = vmatprep.subr.bf16.mxu0 %v1860_v54  ;;  %1817 = vmatprep.subr.bf16.mxu1 %v1860_v54  ;;  %v1862_v39 = vld [vmem:[#allocation10 + $0x10] sm:$0xff]   ;;  %v1863_v63 = vld [vmem:[#allocation10 + $0x18] sm:$0xff]  }
 0x116   :  { %v740_v41 = vpack.c.bf16 %v715_v50, %v714_v16  ;;  %1786 = vmatpush3.bf16.msra.mxu0 %v1860_v54  ;;  %1825 = vmatpush3.bf16.msra.mxu1 %v1860_v54 }
 0x117   :  { %v716_v44 = vcombine.low %v666_v21, %v667_v27  ;;  %v717_v58 = vcombine.low %v668_v31, %v669_v22  ;;  %1787 = vmatprep.subr.bf16.mxu0 %v1861_v55  ;;  %1818 = vmatprep.subr.bf16.mxu1 %v1861_v55 }
 0x118   :  { %1749 = vmatprep.mubr.bf16.mxu0 %v740_v41  ;;  %1781 = vmatprep.mubr.bf16.mxu1 %v740_v41 }
 0x119   :  { %v741_v59 = vpack.c.bf16 %v717_v58, %v716_v44 }
 0x11a   :  { %1788 = vmatpush3.bf16.msra.mxu0 %v1861_v55  ;;  %1826 = vmatpush3.bf16.msra.mxu1 %v1861_v55 }
 0x11b   :  { %1789 = vmatprep.subr.bf16.mxu0 %v1862_v39  ;;  %1819 = vmatprep.subr.bf16.mxu1 %v1862_v39 }
 0x11c   :  { %1750 = vmatmul.mubr.bf16.gmra.mrb[12].mxu0 %v741_v59  ;;  %1782 = vmatmul.mubr.bf16.gmra.mrb[12].mxu1 %v741_v59 }
 0x11e   :  { %1790 = vmatpush3.bf16.msra.mxu0 %v1862_v39  ;;  %1827 = vmatpush3.bf16.msra.mxu1 %v1862_v39 }
 0x11f   :  { %1791 = vmatprep.subr.bf16.mxu0 %v1863_v63  ;;  %1820 = vmatprep.subr.bf16.mxu1 %v1863_v63 }
 0x122   :  { %1792 = vmatpush3.bf16.msra.mxu0 %v1863_v63  ;;  %1828 = vmatpush3.bf16.msra.mxu1 %v1863_v63 }
 0x123   :  { %1793 = vmatprep.subr.bf16.mxu0 %v1864_v23  ;;  %1821 = vmatprep.subr.bf16.mxu1 %v1864_v23 }
 0x126   :  { %1794 = vmatpush3.bf16.msra.mxu0 %v1864_v23  ;;  %1829 = vmatpush3.bf16.msra.mxu1 %v1864_v23 }
 0x127   :  { %1795 = vmatprep.subr.bf16.mxu0 %v1865_v26  ;;  %1822 = vmatprep.subr.bf16.mxu1 %v1865_v26 }
 0x12a   :  { %1796 = vmatpush3.bf16.msra.mxu0 %v1865_v26  ;;  %1830 = vmatpush3.bf16.msra.mxu1 %v1865_v26 }
 0x12b   :  { %1797 = vmatprep.subr.bf16.mxu0 %v1866_v3  ;;  %1823 = vmatprep.subr.bf16.mxu1 %v1866_v3 }
 0x12e   :  { %1798 = vmatpush3.bf16.msra.mxu0 %v1866_v3  ;;  %1831 = vmatpush3.bf16.msra.mxu1 %v1866_v3 }
 0x12f   :  { %1799 = vmatprep.subr.bf16.mxu0 %v1867_v32  ;;  %1824 = vmatprep.subr.bf16.mxu1 %v1867_v32 }
 0x132   :  { %1800 = vmatpush3.bf16.msra.mxu0 %v1867_v32  ;;  %1832 = vmatpush3.bf16.msra.mxu1 %v1867_v32 }
 0x1d3   :  { %v2461_v6 = vpop.f32.mrb[0].mxu0  ;;  %v2463_v9 = vpop.f32.mrb[0].mxu1 }
 0x1d4   :  { %v1650_v4 = vmul.f32 -1.442695, %v2463_v9  ;;  %v2466_v33 = vpop.f32.mrb[1].mxu0  ;;  %v1033_v1 = vpop.f32.mrb[1].mxu1 }
 0x1d5   :  { %v1648_v2 = vmul.f32 -1.442695, %v1033_v1  ;;  %v2468_v25 = vpop.f32.mrb[2].mxu0  ;;  %v2470_v34 = vpop.f32.mrb[2].mxu1 }
 0x1d6   :  { %1900 = vpow2.f32 %v1650_v4  ;;  %v1651_v35 = vmul.f32 -1.442695, %v2470_v34  ;;  %v2473_v60 = vpop.f32.mrb[3].mxu0  ;;  %v2475_v61 = vpop.f32.mrb[3].mxu1 }
 0x1d7   :  { %1902 = vpow2.f32 %v1648_v2  ;;  %v1649_v38 = vmul.f32 -1.442695, %v2475_v61 }
 0x1d8   :  { %1904 = vpow2.f32 %v1651_v35 }
 0x1d9   :  { %1906 = vpow2.f32 %v1649_v38 }
 0x1df   :  { %v2478_v42 = vpop.f32.mrb[4].mxu0  ;;  %v2480_v47 = vpop.f32.mrb[4].mxu1 }
 0x1e0   :  { %v1901_v48 = vpop.eup %1900  ;;  %v1654_v49 = vmul.f32 -1.442695, %v2480_v47  ;;  %v2483_v51 = vpop.f32.mrb[5].mxu0 }
 0x1e1   :  { %v2485_v52 = vpop.f32.mrb[5].mxu1  ;;  %v1903_v36 = vpop.eup %1902  ;;  %v1146_v53 = vadd.f32 1.0, %v1901_v48 }
 0x1e2   :  { %v2487_v56 = vpop.f32.mrb[6].mxu0  ;;  %v2489_v40 = vpop.f32.mrb[6].mxu1  ;;  %v1144_v29 = vadd.f32 1.0, %v1903_v36  ;;  %1908 = vpow2.f32 %v1654_v49  ;;  %v1652_v62 = vmul.f32 -1.442695, %v2485_v52 }
 0x1e3   :  { %v1905_v17 = vpop.eup %1904  ;;  %v2491_v19 = vpop.f32.mrb[7].mxu0  ;;  %1910 = vrcp.f32 %v1146_v53  ;;  %v1655_v0 = vmul.f32 -1.442695, %v2489_v40 }
 0x1e4   :  { %v2493_v12 = vpop.f32.mrb[7].mxu1  ;;  %v1907_v30 = vpop.eup %1906  ;;  %v1147_v57 = vadd.f32 1.0, %v1905_v17  ;;  %1912 = vrcp.f32 %v1144_v29 }
 0x1e5   :  { %v1145_v13 = vadd.f32 1.0, %v1907_v30  ;;  %v1653_v18 = vmul.f32 -1.442695, %v2493_v12 }
 0x1e6   :  { %1914 = vrcp.f32 %v1147_v57 }
 0x1e7   :  { %1916 = vrcp.f32 %v1145_v13  ;;  %v2498_v24 = vpop.f32.mrb[8].mxu0  ;;  %v2500_v10 = vpop.f32.mrb[8].mxu1 }
 0x1e8   :  { %1918 = vpow2.f32 %v1652_v62  ;;  %v1658_v5 = vmul.f32 -1.442695, %v2500_v10  ;;  %v2503_v8 = vpop.f32.mrb[9].mxu0  ;;  %v2505_v14 = vpop.f32.mrb[9].mxu1 }
 0x1e9   :  { %1920 = vpow2.f32 %v1655_v0  ;;  %v1656_v43 = vmul.f32 -1.442695, %v2505_v14  ;;  %v2508_v46 = vpop.f32.mrb[10].mxu0  ;;  %v2510_v11 = vpop.f32.mrb[10].mxu1 }
 0x1ea   :  { %1922 = vpow2.f32 %v1653_v18  ;;  %v1659_v15 = vmul.f32 -1.442695, %v2510_v11  ;;  %v2513_v28 = vpop.f32.mrb[11].mxu0  ;;  %v2515_v16 = vpop.f32.mrb[11].mxu1 }
 0x1eb   :  { %1924 = vpow2.f32 %v1658_v5  ;;  %v1657_v7 = vmul.f32 -1.442695, %v2515_v16 }
 0x1ec   :  { %1926 = vpow2.f32 %v1656_v43  ;;  %v1909_v37 = vpop.eup %1908 }
 0x1ed   :  { %1928 = vpow2.f32 %v1659_v15  ;;  %v1911_v45 = vpop.eup %1910  ;;  %v1150_v20 = vadd.f32 1.0, %v1909_v37 }
 0x1ee   :  { %1930 = vpow2.f32 %v1657_v7  ;;  %v1913_v50 = vpop.eup %1912  ;;  %v1194_v21 = vmul.f32 %v1911_v45, %v2463_v9 }
 0x1ef   :  { %v1192_v31 = vmul.f32 %v1913_v50, %v1033_v1  ;;  %1932 = vrcp.f32 %v1150_v20  ;;  %v2519_v22 = vpop.f32.mrb[12].mxu0  ;;  %v2521_v41 = vpop.f32.mrb[12].mxu1 }
 0x1f0   :  { %v1915_v27 = vpop.eup %1914  ;;  %v1210_v58 = vmul.f32 %v2461_v6, %v1194_v21  ;;  %v1662_v54 = vmul.f32 -1.442695, %v2521_v41  ;;  %v2526_v55 = vpop.f32.mrb[13].mxu0 }
 0x1f1   :  { %v1917_v44 = vpop.eup %1916  ;;  %v1195_v59 = vmul.f32 %v1915_v27, %v2470_v34  ;;  %v2528_v39 = vpop.f32.mrb[13].mxu1  ;;  %v1208_v23 = vmul.f32 %v1192_v31, %v2466_v33 }
 0x1f2   :  { %v1919_v63 = vpop.eup %1918  ;;  %v1193_v26 = vmul.f32 %v1917_v44, %v2475_v61  ;;  %v1660_v3 = vmul.f32 -1.442695, %v2528_v39  ;;  %v2533_v32 = vpop.f32.mrb[14].mxu0  ;;  %1934 = vpow2.f32 %v1662_v54 }
 0x1f3   :  { %v2535_v9 = vpop.f32.mrb[14].mxu1  ;;  %v1921_v6 = vpop.eup %1920  ;;  %v1211_v4 = vmul.f32 %v2468_v25, %v1195_v59  ;;  %v1148_v1 = vadd.f32 1.0, %v1919_v63 }
 0x1f4   :  { %v2538_v2 = vpop.f32.mrb[15].mxu0  ;;  %v2540_v34 = vpop.f32.mrb[15].mxu1  ;;  %v1209_v33 = vmul.f32 %v1193_v26, %v2473_v60  ;;  %v1151_v38 = vadd.f32 1.0, %v1921_v6  ;;  %1936 = vpow2.f32 %v1660_v3  ;;  %v1663_v62 = vmul.f32 -1.442695, %v2535_v9 }
 0x1f5   :  { %v1923_v35 = vpop.eup %1922  ;;  %v1241_v48 = vpack.c.bf16 %v1211_v4, %v1210_v58  ;;  %1938 = vrcp.f32 %v1148_v1  ;;  %v1661_v13 = vmul.f32 -1.442695, %v2540_v34 }
 0x1f6   :  { %v1925_v61 = vpop.eup %1924  ;;  %v1149_v49 = vadd.f32 1.0, %v1923_v35  ;;  %1940 = vrcp.f32 %v1151_v38  ;;  %v1240_v17 = vpack.c.bf16 %v1209_v33, %v1208_v23 }
 0x1f7   :  { %v1927_v36 = vpop.eup %1926  ;;  %v1154_v53 = vadd.f32 1.0, %v1925_v61 }
 0x1f8   :  { %v1929_v25 = vpop.eup %1928  ;;  %1942 = vrcp.f32 %v1149_v49  ;;  %v1152_v29 = vadd.f32 1.0, %v1927_v36  ;;  %1801 = vmatprep.mubr.bf16.mxu0 %v1240_v17 }
 0x1f9   :  { %v1931_v30 = vpop.eup %1930  ;;  %1944 = vrcp.f32 %v1154_v53  ;;  %v1155_v57 = vadd.f32 1.0, %v1929_v25  ;;  %1802 = vmatmul.mubr.bf16.vlgmr.msra.gmra.mrb[16].mxu0 %v1241_v48 }
 0x1fa   :  { %1946 = vrcp.f32 %v1152_v29  ;;  %v1153_v60 = vadd.f32 1.0, %v1931_v30  ;;  %v1933_v0 = vpop.eup %1932 }
 0x1fb   :  { %1948 = vrcp.f32 %v1155_v57  ;;  %v1198_v18 = vmul.f32 %v1933_v0, %v2480_v47 }
 0x1fc   :  { %1950 = vrcp.f32 %v1153_v60  ;;  %v1935_v5 = vpop.eup %1934 }
 0x1fd   :  { %1952 = vpow2.f32 %v1663_v62  ;;  %v1214_v43 = vmul.f32 %v2478_v42, %v1198_v18  ;;  %v1158_v7 = vadd.f32 1.0, %v1935_v5 }
 0x1fe   :  { %1954 = vpow2.f32 %v1661_v13  ;;  %v1937_v15 = vpop.eup %1936 }
 0x1ff   :  { %v1939_v37 = vpop.eup %1938  ;;  %v1156_v45 = vadd.f32 1.0, %v1937_v15  ;;  %1956 = vrcp.f32 %v1158_v7 }
 0x200   :  { %v1941_v20 = vpop.eup %1940  ;;  %v1196_v50 = vmul.f32 %v1939_v37, %v2485_v52 }
 0x201   :  { %v1199_v27 = vmul.f32 %v1941_v20, %v2489_v40  ;;  %1958 = vrcp.f32 %v1156_v45 }
 0x202   :  { %v1943_v21 = vpop.eup %1942  ;;  %v1212_v47 = vmul.f32 %v1196_v50, %v2483_v51 }
 0x203   :  { %v1945_v31 = vpop.eup %1944  ;;  %v1197_v44 = vmul.f32 %v1943_v21, %v2493_v12  ;;  %v1215_v42 = vmul.f32 %v2487_v56, %v1199_v27 }
 0x204   :  { %v1947_v58 = vpop.eup %1946  ;;  %v1202_v59 = vmul.f32 %v1945_v31, %v2500_v10 }
 0x205   :  { %v1949_v54 = vpop.eup %1948  ;;  %v1213_v63 = vmul.f32 %v1197_v44, %v2491_v19  ;;  %v1200_v52 = vmul.f32 %v1947_v58, %v2505_v14  ;;  %v1243_v3 = vpack.c.bf16 %v1215_v42, %v1214_v43 }
 0x206   :  { %v1951_v23 = vpop.eup %1950  ;;  %v1218_v26 = vmul.f32 %v2498_v24, %v1202_v59  ;;  %v1203_v40 = vmul.f32 %v1949_v54, %v2510_v11 }
 0x207   :  { %v1953_v6 = vpop.eup %1952  ;;  %v1216_v51 = vmul.f32 %v1200_v52, %v2503_v8  ;;  %v1201_v12 = vmul.f32 %v1951_v23, %v2515_v16  ;;  %v1242_v4 = vpack.c.bf16 %v1213_v63, %v1212_v47 }
 0x208   :  { %v1955_v56 = vpop.eup %1954  ;;  %v1219_v10 = vmul.f32 %v2508_v46, %v1203_v40  ;;  %v1159_v1 = vadd.f32 1.0, %v1953_v6 }
 0x209   :  { %v1217_v19 = vmul.f32 %v1201_v12, %v2513_v28  ;;  %v1157_v35 = vadd.f32 1.0, %v1955_v56  ;;  %1805 = vmatprep.mubr.bf16.mxu0 %v1242_v4  ;;  %v1957_v24 = vpop.eup %1956 }
 0x20a   :  { %v1245_v14 = vpack.c.bf16 %v1219_v10, %v1218_v26  ;;  %1960 = vrcp.f32 %v1159_v1  ;;  %1806 = vmatmul.mubr.bf16.gmra.mrb[20].mxu0 %v1243_v3  ;;  %v1206_v8 = vmul.f32 %v1957_v24, %v2521_v41  ;;  %v2636_v1 = vld [vmem:[%s2690_s5] ss:$0 sm:$0xff] }
 0x20b   :  { %1962 = vrcp.f32 %v1157_v35  ;;  %v1244_v11 = vpack.c.bf16 %v1217_v19, %v1216_v51  ;;  %v1959_v33 = vpop.eup %1958 }
 0x20c   :  { %v1204_v16 = vmul.f32 %v1959_v33, %v2528_v39  ;;  %v1222_v38 = vmul.f32 %v2519_v22, %v1206_v8 }
 0x20d   :  { %1809 = vmatprep.mubr.bf16.mxu1 %v1244_v11 }
 0x20e   :  { %1810 = vmatmul.mubr.bf16.vlgmr.msra.gmra.mrb[16].mxu1 %v1245_v14  ;;  %v1220_v46 = vmul.f32 %v1204_v16, %v2526_v55 }
 0x214   :  { %v1961_v28 = vpop.eup %1960 }
 0x215   :  { %v1963_v61 = vpop.eup %1962  ;;  %v1207_v48 = vmul.f32 %v1961_v28, %v2535_v9 }
 0x216   :  { %v1205_v49 = vmul.f32 %v1963_v61, %v2540_v34 }
 0x217   :  { %v1223_v36 = vmul.f32 %v2533_v32, %v1207_v48 }
 0x218   :  { %v1221_v53 = vmul.f32 %v1205_v49, %v2538_v2 }
 0x219   :  { %v1247_v17 = vpack.c.bf16 %v1223_v36, %v1222_v38 }
 0x21a   :  { %v1246_v41 = vpack.c.bf16 %v1221_v53, %v1220_v46 }
 0x21c   :  { %1813 = vmatprep.mubr.bf16.mxu1 %v1246_v41 }
 0x21d   :  { %1814 = vmatmul.mubr.bf16.gmra.mrb[20].mxu1 %v1247_v17 }
 0x2cc   :  { %v2569_v39 = vpop.f32.mrb[16].mxu0 }
 0x2cd   :  { %v2571_v22 = vpop.f32.mrb[17].mxu0  ;;  %v1462_v55 = vmul.f32 %v2569_v39, %v2569_v39 }
 0x2ce   :  { %v2575_v25 = vpop.f32.mrb[18].mxu0  ;;  %v1460_v2 = vmul.f32 %v2571_v22, %v2571_v22 }
 0x2cf   :  { %1480 = vadd.xlane.f32.xlu0 %v1462_v55  ;;  %v2577_v9 = vpop.f32.mrb[19].mxu0  ;;  %v1463_v32 = vmul.f32 %v2575_v25, %v2575_v25 }
 0x2d0   :  { %v1461_v34 = vmul.f32 %v2577_v9, %v2577_v9 }
 0x2d1   :  { %1482 = vadd.xlane.f32.xlu1 %v1463_v32 }
 0x2d3   :  { %1476 = vadd.xlane.f32.xlu0 %v1460_v2 }
 0x2d5   :  { %1478 = vadd.xlane.f32.xlu1 %v1461_v34 }
 0x2dd   :  { %v2585_v29 = vpop.f32.mrb[20].mxu0 }
 0x2de   :  { %v2587_v30 = vpop.f32.mrb[21].mxu0  ;;  %v1466_v57 = vmul.f32 %v2585_v29, %v2585_v29 }
 0x2df   :  { %v2591_v62 = vpop.f32.mrb[22].mxu0  ;;  %v1464_v18 = vmul.f32 %v2587_v30, %v2587_v30 }
 0x2e0   :  { %1488 = vadd.xlane.f32.xlu0 %v1466_v57  ;;  %v2593_v60 = vpop.f32.mrb[23].mxu0  ;;  %v1467_v13 = vmul.f32 %v2591_v62, %v2591_v62 }
 0x2e1   :  { %v2597_v0 = vpop.f32.mrb[16].mxu1  ;;  %v1465_v15 = vmul.f32 %v2593_v60, %v2593_v60 }
 0x2e2   :  { %1490 = vadd.xlane.f32.xlu1 %v1467_v13  ;;  %v2601_v5 = vpop.f32.mrb[17].mxu1  ;;  %v1470_v37 = vmul.f32 %v2597_v0, %v2597_v0 }
 0x2e3   :  { %v2603_v43 = vpop.f32.mrb[18].mxu1  ;;  %v1468_v20 = vmul.f32 %v2601_v5, %v2601_v5 }
 0x2e4   :  { %1484 = vadd.xlane.f32.xlu0 %v1464_v18  ;;  %v2607_v7 = vpop.f32.mrb[19].mxu1  ;;  %v1471_v45 = vmul.f32 %v2603_v43, %v2603_v43 }
 0x2e5   :  { %v1469_v50 = vmul.f32 %v2607_v7, %v2607_v7 }
 0x2e6   :  { %1486 = vadd.xlane.f32.xlu1 %v1465_v15 }
 0x2e8   :  { %1496 = vadd.xlane.f32.xlu0 %v1470_v37 }
 0x2ea   :  { %1498 = vadd.xlane.f32.xlu1 %v1471_v45 }
 0x2ec   :  { %1492 = vadd.xlane.f32.xlu0 %v1468_v20 }
 0x2ee   :  { %1494 = vadd.xlane.f32.xlu1 %v1469_v50 }
 0x2f0   :  { %v2617_v21 = vpop.f32.mrb[20].mxu1 }
 0x2f1   :  { %v2619_v27 = vpop.f32.mrb[21].mxu1  ;;  %v1474_v42 = vmul.f32 %v2617_v21, %v2617_v21 }
 0x2f2   :  { %v2621_v31 = vpop.f32.mrb[22].mxu1  ;;  %v1472_v47 = vmul.f32 %v2619_v27, %v2619_v27 }
 0x2f3   :  { %v2625_v44 = vpop.f32.mrb[23].mxu1  ;;  %v1475_v59 = vmul.f32 %v2621_v31, %v2621_v31 }
 0x2f4   :  { %v1473_v58 = vmul.f32 %v2625_v44, %v2625_v44  ;;  %1500 = vadd.xlane.f32.xlu0 %v1472_v47 }
 0x2f6   :  { %1502 = vadd.xlane.f32.xlu1 %v1473_v58 }
 0x2f8   :  { %1504 = vadd.xlane.f32.xlu0 %v1474_v42 }
 0x2fa   :  { %1506 = vadd.xlane.f32.xlu1 %v1475_v59 }
 0x35c   :  { %v1481_v54 = vpop.xlane.xlu0 %1480 }
 0x35d   :  { %v1511_v63 = vmul.f32 0.0078125, %v1481_v54 }
 0x35e   :  { %v1483_v52 = vpop.xlane.xlu1 %1482 }
 0x35f   :  { %v1527_v23 = vadd.f32 1e-06, %v1511_v63  ;;  %v1512_v26 = vmul.f32 0.0078125, %v1483_v52 }
 0x360   :  { %v1477_v40 = vpop.xlane.xlu0 %1476 }
 0x361   :  { %1964 = vrsqrt.f32 %v1527_v23  ;;  %v1528_v3 = vadd.f32 1e-06, %v1512_v26  ;;  %v1509_v6 = vmul.f32 0.0078125, %v1477_v40 }
 0x362   :  { %v1479_v51 = vpop.xlane.xlu1 %1478 }
 0x363   :  { %1966 = vrsqrt.f32 %v1528_v3  ;;  %v1525_v12 = vadd.f32 1e-06, %v1509_v6  ;;  %v1510_v4 = vmul.f32 0.0078125, %v1479_v51 }
 0x365   :  { %1968 = vrsqrt.f32 %v1525_v12  ;;  %v1526_v56 = vadd.f32 1e-06, %v1510_v4 }
 0x367   :  { %1970 = vrsqrt.f32 %v1526_v56 }
 0x36b   :  { %v1965_v10 = vpop.eup %1964 }
 0x36c   :  { %v1559_v19 = vmul.f32 %v1965_v10, %v2569_v39 }
 0x36d   :  { %v1489_v35 = vpop.xlane.xlu0 %1488  ;;  %v1967_v14 = vpop.eup %1966 }
 0x36e   :  { %v1515_v24 = vmul.f32 0.0078125, %v1489_v35  ;;  %v1582_v11 = vmul.f32 %v2636_v1, %v1559_v19  ;;  %v1560_v33 = vmul.f32 %v1967_v14, %v2575_v25 }
 0x36f   :  { %v1491_v8 = vpop.xlane.xlu1 %1490  ;;  %v1969_v16 = vpop.eup %1968 }
 0x370   :  { %v1531_v38 = vadd.f32 1e-06, %v1515_v24  ;;  %v1516_v46 = vmul.f32 0.0078125, %v1491_v8  ;;  %1598 = vst [vmem:[#allocation12 + $0x10] sm:$0xff] %v1582_v11  ;;  %v1583_v28 = vmul.f32 %v2636_v1, %v1560_v33  ;;  %v1557_v61 = vmul.f32 %v1969_v16, %v2571_v22 }
 0x371   :  { %v1485_v48 = vpop.xlane.xlu0 %1484  ;;  %v1971_v49 = vpop.eup %1970 }
 0x372   :  { %1972 = vrsqrt.f32 %v1531_v38  ;;  %v1532_v36 = vadd.f32 1e-06, %v1516_v46  ;;  %v1513_v53 = vmul.f32 0.0078125, %v1485_v48  ;;  %1599 = vst [vmem:[#allocation12 + $0x18] sm:$0xff] %v1583_v28  ;;  %v1580_v17 = vmul.f32 %v2636_v1, %v1557_v61 }
 0x373   :  { %v1558_v41 = vmul.f32 %v1971_v49, %v2577_v9  ;;  %v1487_v39 = vpop.xlane.xlu1 %1486 }
 0x374   :  { %1974 = vrsqrt.f32 %v1532_v36  ;;  %v1529_v55 = vadd.f32 1e-06, %v1513_v53  ;;  %v1514_v25 = vmul.f32 0.0078125, %v1487_v39  ;;  %1596 = vst [vmem:[#allocation12] sm:$0xff] %v1580_v17 }
 0x375   :  { %v1581_v32 = vmul.f32 %v2636_v1, %v1558_v41  ;;  %v1497_v2 = vpop.xlane.xlu0 %1496 }
 0x376   :  { %1976 = vrsqrt.f32 %v1529_v55  ;;  %v1530_v22 = vadd.f32 1e-06, %v1514_v25  ;;  %v1519_v34 = vmul.f32 0.0078125, %v1497_v2 }
 0x377   :  { %1597 = vst [vmem:[#allocation12 + $0x8] sm:$0xff] %v1581_v32  ;;  %v1499_v57 = vpop.xlane.xlu1 %1498 }
 0x378   :  { %1978 = vrsqrt.f32 %v1530_v22  ;;  %v1535_v13 = vadd.f32 1e-06, %v1519_v34  ;;  %v1520_v18 = vmul.f32 0.0078125, %v1499_v57 }
 0x379   :  { %v1493_v15 = vpop.xlane.xlu0 %1492 }
 0x37a   :  { %1980 = vrsqrt.f32 %v1535_v13  ;;  %v1536_v37 = vadd.f32 1e-06, %v1520_v18  ;;  %v1517_v9 = vmul.f32 0.0078125, %v1493_v15 }
 0x37b   :  { %v1495_v45 = vpop.xlane.xlu1 %1494 }
 0x37c   :  { %v1973_v20 = vpop.eup %1972  ;;  %1982 = vrsqrt.f32 %v1536_v37  ;;  %v1533_v50 = vadd.f32 1e-06, %v1517_v9  ;;  %v1518_v47 = vmul.f32 0.0078125, %v1495_v45 }
 0x37d   :  { %v1563_v58 = vmul.f32 %v1973_v20, %v2585_v29 }
 0x37e   :  { %v1975_v42 = vpop.eup %1974  ;;  %1984 = vrsqrt.f32 %v1533_v50  ;;  %v1534_v59 = vadd.f32 1e-06, %v1518_v47 }
 0x37f   :  { %v1586_v54 = vmul.f32 %v2636_v1, %v1563_v58  ;;  %v1564_v63 = vmul.f32 %v1975_v42, %v2591_v62 }
 0x380   :  { %v1977_v52 = vpop.eup %1976  ;;  %1986 = vrsqrt.f32 %v1534_v59 }
 0x381   :  { %1602 = vst [vmem:[#allocation12 + $0x30] sm:$0xff] %v1586_v54  ;;  %v1587_v23 = vmul.f32 %v2636_v1, %v1564_v63  ;;  %v1561_v26 = vmul.f32 %v1977_v52, %v2587_v30  ;;  %v1501_v40 = vpop.xlane.xlu0 %1500 }
 0x382   :  { %v1979_v3 = vpop.eup %1978  ;;  %v1521_v6 = vmul.f32 0.0078125, %v1501_v40 }
 0x383   :  { %1603 = vst [vmem:[#allocation12 + $0x38] sm:$0xff] %v1587_v23  ;;  %v1584_v29 = vmul.f32 %v2636_v1, %v1561_v26  ;;  %v1562_v51 = vmul.f32 %v1979_v3, %v2593_v60  ;;  %v1503_v12 = vpop.xlane.xlu1 %1502 }
 0x384   :  { %v1981_v4 = vpop.eup %1980  ;;  %v1537_v56 = vadd.f32 1e-06, %v1521_v6  ;;  %v1522_v10 = vmul.f32 0.0078125, %v1503_v12 }
 0x385   :  { %1600 = vst [vmem:[#allocation12 + $0x20] sm:$0xff] %v1584_v29  ;;  %v1585_v62 = vmul.f32 %v2636_v1, %v1562_v51  ;;  %v1567_v19 = vmul.f32 %v1981_v4, %v2597_v0  ;;  %v1505_v35 = vpop.xlane.xlu0 %1504 }
 0x386   :  { %v1983_v14 = vpop.eup %1982  ;;  %1988 = vrsqrt.f32 %v1537_v56  ;;  %v1538_v30 = vadd.f32 1e-06, %v1522_v10  ;;  %v1523_v24 = vmul.f32 0.0078125, %v1505_v35 }
 0x387   :  { %1601 = vst [vmem:[#allocation12 + $0x28] sm:$0xff] %v1585_v62  ;;  %v1590_v11 = vmul.f32 %v2636_v1, %v1567_v19  ;;  %v1568_v33 = vmul.f32 %v1983_v14, %v2603_v43  ;;  %v1507_v60 = vpop.xlane.xlu1 %1506 }
 0x388   :  { %v1985_v8 = vpop.eup %1984  ;;  %1990 = vrsqrt.f32 %v1538_v30  ;;  %v1539_v16 = vadd.f32 1e-06, %v1523_v24  ;;  %v1524_v38 = vmul.f32 0.0078125, %v1507_v60 }
 0x389   :  { %1606 = vst [vmem:[#allocation12 + $0x50] sm:$0xff] %v1590_v11  ;;  %v1591_v46 = vmul.f32 %v2636_v1, %v1568_v33  ;;  %v1565_v0 = vmul.f32 %v1985_v8, %v2601_v5 }
 0x38a   :  { %v1987_v28 = vpop.eup %1986  ;;  %1992 = vrsqrt.f32 %v1539_v16  ;;  %v1540_v61 = vadd.f32 1e-06, %v1524_v38 }
 0x38b   :  { %1607 = vst [vmem:[#allocation12 + $0x58] sm:$0xff] %v1591_v46  ;;  %v1588_v48 = vmul.f32 %v2636_v1, %v1565_v0  ;;  %v1566_v49 = vmul.f32 %v1987_v28, %v2607_v7 }
 0x38c   :  { %1994 = vrsqrt.f32 %v1540_v61 }
 0x38d   :  { %1604 = vst [vmem:[#allocation12 + $0x40] sm:$0xff] %v1588_v48  ;;  %v1589_v43 = vmul.f32 %v2636_v1, %v1566_v49 }
 0x38f   :  { %1605 = vst [vmem:[#allocation12 + $0x48] sm:$0xff] %v1589_v43 }
 0x390   :  { %v1989_v36 = vpop.eup %1988 }
 0x391   :  { %v1569_v53 = vmul.f32 %v1989_v36, %v2619_v27 }
 0x392   :  { %v1991_v17 = vpop.eup %1990 }
 0x393   :  { %v1592_v41 = vmul.f32 %v2636_v1, %v1569_v53  ;;  %v1570_v5 = vmul.f32 %v1991_v17, %v2625_v44 }
 0x394   :  { %v1993_v39 = vpop.eup %1992 }
 0x395   :  { %1608 = vst [vmem:[#allocation12 + $0x60] sm:$0xff] %v1592_v41  ;;  %v1593_v55 = vmul.f32 %v2636_v1, %v1570_v5  ;;  %v1571_v25 = vmul.f32 %v1993_v39, %v2617_v21 }
 0x396   :  { %v1995_v7 = vpop.eup %1994 }
 0x397   :  { %1609 = vst [vmem:[#allocation12 + $0x68] sm:$0xff] %v1593_v55  ;;  %v1594_v32 = vmul.f32 %v2636_v1, %v1571_v25  ;;  %v1572_v2 = vmul.f32 %v1995_v7, %v2621_v31 }
 0x399   :  { %1610 = vst [vmem:[#allocation12 + $0x70] sm:$0xff] %v1594_v32  ;;  %v1595_v27 = vmul.f32 %v2636_v1, %v1572_v2 }
 0x39b   :  { %1611 = vst [vmem:[#allocation12 + $0x78] sm:$0xff] %v1595_v27 }
 0x39c   :  { %1616 = vsyncadd [#allocation6], 1984  ;;  %s2124_s5 = smov [#allocation12]  }
 0x39d   :  { %s1617_s26 = sshll.u32 %s2124_s5, 4  ;;  %s1618_s26 = int_to_ptr.vmem [resolvable:$true] %s1617_s26 }
 0x39e   :  { %s2084_s27 = scalar_lea.vmem %s1618_s26, 64  ;;  %s2088_s28 = scalar_lea.vmem %s1618_s26, 2048 }
 0x39f   :  { %p2085_p4 = scmp.ne.s32.totalorder %s1618_s26, %s2084_s27  ;;  %p2089_p5 = scmp.lt.s32.totalorder %s1618_s26, %s1618_s26 }
 0x3a0   :  { %p2090_p6 = scmp.lt.s32.totalorder %s2088_s28, %s2084_s27 }
 0x3a2   :  { %p2091_p7 = por %p2090_p6, %p2089_p5 }
 0x3a4   :  { %p2092_p8 = pnand %p2091_p7, %p2085_p4 }
 0x3a6   :  { %2095 = shalt.err (!%p2092_p8)
}
 0x3a7   :  { %s2096_s9 = scalar_lea.hbm %s2691_s6, 64 }
 0x3a8   :  { %p2097_p9 = scmp.ne.s32.totalorder %s2691_s6, %s2096_s9  ;;  %p2100_p10 = scmp.lt.u32.totalorder %s2096_s9, %s2691_s6 }
 0x3aa   :  { %p2102_p11 = pnand %p2100_p10, %p2097_p9 }
 0x3ac   :  { %2105 = shalt.err (!%p2102_p11)
}
 0x3ad   :  { %1623 = dma.vmem_to_hbm [thread:$0]  %s1618_s26, 64, %s2691_s6, [#allocation6], %s2115_s7, %s2115_s7, %s2116_s8  }
 0x3ae   :  { %2112 = dma.done.wait [#allocation6], 2048  }
 0x3af   :  { %2113 = vsyncadd [#allocation6], 4294965248 }
 0x3b0   :  { %1627 = vsyncpa [#allocation5], 1 }
 0x3b1   :  { %1628 = vsyncpa [#allocation8], 1 }
 0x3b2   :  { %1629 = vsyncpa [#allocation11], 1 }
 0x3b3   :  { %1630 = vsyncpa [#allocation6], 1 }

// kernel: tpu_custom_call.1
= control target key start
LH: loop header
LB: loop body
LE: loop exit
PB: predicated region body
PF: predicated region fallthrough
CT: control target
= control target key end

     0   :  { %11 = vsyncpa [#allocation5], 0  ;;  %s2685_s0 = inlined_call_operand.hbm [shape: bf16[4,128], index: 0, kind: input, shape index: {}]   ;;  %s2686_s1 = inlined_call_operand.vmem [shape: f32[1,128], index: 1, kind: input, shape index: {}]   ;;  %s2687_s2 = inlined_call_operand.hbm [shape: bf16[128,128], index: 2, kind: input, shape index: {}]   ;;  %s2688_s3 = inlined_call_operand.hbm [shape: bf16[128,128], index: 3, kind: input, shape index: {}]   ;;  %s2689_s4 = inlined_call_operand.hbm [shape: bf16[128,128], index: 4, kind: input, shape index: {}]   ;;  %s2690_s5 = inlined_call_operand.vmem [shape: f32[1,128], index: 5, kind: input, shape index: {}]   ;;  %s2691_s6 = inlined_call_operand.hbm [shape: f32[4,128], index: 6, kind: output, shape index: {}]  }
   0x1   :  { %12 = vsyncpa [#allocation8], 0 }
   0x2   :  { %13 = vsyncpa [#allocation11], 0 }
   0x3   :  { %14 = vsyncpa [#allocation6], 0 }
   0x4   :  { %19 = vsyncadd [#allocation5], 992  ;;  %s2114_s21 = smov [#allocation7]   ;;  %s1996_s25 = scalar_lea.hbm %s2687_s2, 1024 }
   0x5   :  { %s34_s22 = sshll.u32 %s2114_s21, 4  ;;  %p1997_p0 = scmp.ne.s32.totalorder %s2687_s2, %s1996_s25  ;;  %s35_s22 = int_to_ptr.vmem [resolvable:$true] %s34_s22 }
   0x6   :  { %p2000_p1 = scmp.lt.u32.totalorder %s1996_s25, %s2687_s2 }
   0x8   :  { %p2002_p2 = pnand %p2000_p1, %p1997_p0 }
   0xa   :  { %2005 = shalt.err (!%p2002_p2)
}
   0xb   :  { %s2006_s30 = scalar_lea.vmem %s35_s22, 1024  ;;  %p2011_p4 = scmp.lt.s32.totalorder %s35_s22, %s35_s22 }
   0xc   :  { %p2007_p3 = scmp.ne.s32.totalorder %s35_s22, %s2006_s30  ;;  %p2012_p5 = scmp.lt.s32.totalorder %s2006_s30, %s2006_s30 }
   0xe   :  { %p2013_p6 = por %p2012_p5, %p2011_p4 }
  0x10   :  { %p2014_p7 = pnand %p2013_p6, %p2007_p3 }
  0x12   :  { %2017 = shalt.err (!%p2014_p7)
}
  0x13   :  { %s2115_s7 = smov 64   ;;  %s2116_s8 = smov 4  }
  0x14   :  { %40 = dma.hbm_to_vmem [thread:$0]  %s2687_s2, 1024, %s35_s22, [#allocation8], %s2115_s7, %s2115_s7, %s2116_s8  }
  0x15   :  { %s2117_s11 = smov [#allocation4]   ;;  %s2018_s15 = scalar_lea.hbm %s2685_s0, 32 }
  0x16   :  { %s20_s12 = sshll.u32 %s2117_s11, 4  ;;  %p2019_p8 = scmp.ne.s32.totalorder %s2685_s0, %s2018_s15  ;;  %s21_s12 = int_to_ptr.vmem [resolvable:$true] %s20_s12 }
  0x17   :  { %p2022_p9 = scmp.lt.u32.totalorder %s2018_s15, %s2685_s0 }
  0x19   :  { %p2024_p10 = pnand %p2022_p9, %p2019_p8 }
  0x1b   :  { %2027 = shalt.err (!%p2024_p10)
}
  0x1c   :  { %s2028_s20 = scalar_lea.vmem %s21_s12, 32  ;;  %s2032_s2 = scalar_lea.vmem %s21_s12, 1024 }
  0x1d   :  { %p2029_p11 = scmp.ne.s32.totalorder %s21_s12, %s2028_s20  ;;  %p2033_p12 = scmp.lt.s32.totalorder %s21_s12, %s21_s12 }
  0x1e   :  { %p2034_p13 = scmp.lt.s32.totalorder %s2032_s2, %s2028_s20 }
  0x20   :  { %p2035_p0 = por %p2034_p13, %p2033_p12 }
  0x22   :  { %p2036_p1 = pnand %p2035_p0, %p2029_p11 }
  0x24   :  { %2039 = shalt.err (!%p2036_p1)
}
  0x25   :  { %s2118_s21 = smov 32   ;;  %s2119_s22 = smov 2  }
  0x26   :  { %26 = dma.hbm_to_vmem [thread:$0]  %s2685_s0, 32, %s21_s12, [#allocation5], %s2118_s21, %s2118_s21, %s2119_s22  }
  0x27   :  { %s2120_s25 = smov [#allocation9]   ;;  %s2121_s27 = smov [#allocation10]  }
  0x28   :  { %s46_s26 = sshll.u32 %s2120_s25, 4  ;;  %s58_s28 = sshll.u32 %s2121_s27, 4  ;;  %s47_s26 = int_to_ptr.vmem [resolvable:$true] %s46_s26  ;;  %s2187_s28 = int_to_ptr.vmem [resolvable:$true] %s58_s28 }
  0x29   :  { %s2040_s9 = scalar_lea.hbm %s2688_s3, 1024 }
  0x2a   :  { %p2041_p2 = scmp.ne.s32.totalorder %s2688_s3, %s2040_s9  ;;  %p2044_p3 = scmp.lt.u32.totalorder %s2040_s9, %s2688_s3 }
  0x2c   :  { %p2046_p4 = pnand %p2044_p3, %p2041_p2 }
  0x2e   :  { %2049 = shalt.err (!%p2046_p4)
}
  0x2f   :  { %s2050_s0 = scalar_lea.vmem %s47_s26, 1024  ;;  %p2055_p6 = scmp.lt.s32.totalorder %s47_s26, %s47_s26 }
  0x30   :  { %p2051_p5 = scmp.ne.s32.totalorder %s47_s26, %s2050_s0  ;;  %p2056_p7 = scmp.lt.s32.totalorder %s2050_s0, %s2050_s0 }
  0x32   :  { %p2057_p8 = por %p2056_p7, %p2055_p6 }
  0x34   :  { %p2058_p9 = pnand %p2057_p8, %p2051_p5 }
  0x36   :  { %2061 = shalt.err (!%p2058_p9)
}
  0x37   :  { %52 = dma.hbm_to_vmem [thread:$0]  %s2688_s3, 1024, %s47_s26, [#allocation8], %s2115_s7, %s2115_s7, %s2116_s8  }
  0x38   :  { %s2062_s18 = scalar_lea.hbm %s2689_s4, 1024 }
  0x39   :  { %p2063_p10 = scmp.ne.s32.totalorder %s2689_s4, %s2062_s18  ;;  %p2066_p11 = scmp.lt.u32.totalorder %s2062_s18, %s2689_s4 }
  0x3b   :  { %p2068_p12 = pnand %p2066_p11, %p2063_p10 }
  0x3d   :  { %2071 = shalt.err (!%p2068_p12)
}
  0x3e   :  { %s2072_s22 = scalar_lea.vmem %s2187_s28, 1024  ;;  %p2077_p0 = scmp.lt.s32.totalorder %s2187_s28, %s2187_s28 }
  0x3f   :  { %p2073_p13 = scmp.ne.s32.totalorder %s2187_s28, %s2072_s22  ;;  %p2078_p1 = scmp.lt.s32.totalorder %s2072_s22, %s2072_s22 }
  0x41   :  { %p2079_p2 = por %p2078_p1, %p2077_p0 }
  0x43   :  { %p2080_p3 = pnand %p2079_p2, %p2073_p13 }
  0x45   :  { %2083 = shalt.err (!%p2080_p3)
}
  0x46   :  { %64 = dma.hbm_to_vmem [thread:$0]  %s2689_s4, 1024, %s2187_s28, [#allocation11], %s2115_s7, %s2115_s7, %s2116_s8  }
  0x47   :  { %2106 = dma.done.wait [#allocation5], 1024  }
  0x48   :  { %2107 = vsyncadd [#allocation5], 4294966272 }
  0x49   :  { %2108 = dma.done.wait [#allocation8], 2048  }
  0x4a   :  { %2109 = vsyncadd [#allocation8], 4294965248 }
  0x4b   :  { %2110 = dma.done.wait [#allocation11], 1024  }
  0x4c   :  { %2111 = vsyncadd [#allocation11], 4294966272  ;;  %v88_v0 = vld [vmem:[#allocation4 + $0x8] sm:$0x3]  ;;  %v89_v1 = vld [vmem:[#allocation4 + $0xa] sm:$0x3] }
  0x4d   :  { %v84_v2 = vld [vmem:[#allocation4] sm:$0x3]  ;;  %v2224_v3 = vunpack.c.l.bf16 %v88_v0  ;;  %v2226_v4 = vunpack.c.l.bf16 %v89_v1  ;;  %v85_v5 = vld [vmem:[#allocation4 + $0x2] sm:$0x3]  ;;  %v90_v7 = vld [vmem:[#allocation4 + $0xc] sm:$0x3] }
  0x4e   :  { %v2228_v6 = vunpack.c.l.bf16 %v84_v2  ;;  %v91_v8 = vld [vmem:[#allocation4 + $0xe] sm:$0x3]  ;;  %v2230_v9 = vunpack.c.l.bf16 %v85_v5  ;;  %v2232_v10 = vunpack.c.l.bf16 %v90_v7  ;;  %v86_v12 = vld [vmem:[#allocation4 + $0x4] sm:$0x3]  ;;  %v87_v13 = vld [vmem:[#allocation4 + $0x6] sm:$0x3] }
  0x4f   :  { %v2234_v11 = vunpack.c.l.bf16 %v91_v8  ;;  %v94_v14 = vld [vmem:[#allocation4 + $0x14] sm:$0x3]  ;;  %v152_v15 = vmul.f32 %v2224_v3, %v2224_v3  ;;  %v153_v16 = vmul.f32 %v2226_v4, %v2226_v4  ;;  %v2242_v18 = vunpack.c.l.bf16 %v86_v12  ;;  %v95_v19 = vld [vmem:[#allocation4 + $0x16] sm:$0x3]  ;;  %v92_v20 = vld [vmem:[#allocation4 + $0x10] sm:$0x3] }
  0x50   :  { %v148_v17 = vmul.f32 %v2228_v6, %v2228_v6  ;;  %v149_v21 = vmul.f32 %v2230_v9, %v2230_v9  ;;  %v154_v22 = vmul.f32 %v2232_v10, %v2232_v10  ;;  %v2250_v24 = vunpack.c.l.bf16 %v87_v13  ;;  %v93_v25 = vld [vmem:[#allocation4 + $0x12] sm:$0x3]  ;;  %v98_v26 = vld [vmem:[#allocation4 + $0x1c] sm:$0x3]  ;;  %v99_v31 = vld [vmem:[#allocation4 + $0x1e] sm:$0x3] }
  0x51   :  { %v155_v23 = vmul.f32 %v2234_v11, %v2234_v11  ;;  %v214_v27 = vcombine.low %v152_v15, %v153_v16  ;;  %v150_v28 = vmul.f32 %v2242_v18, %v2242_v18  ;;  %v2254_v29 = vunpack.c.l.bf16 %v94_v14  ;;  %v96_v32 = vld [vmem:[#allocation4 + $0x18] sm:$0x3]  ;;  %v97_v37 = vld [vmem:[#allocation4 + $0x1a] sm:$0x3]  ;;  %v102_v46 = vld [vmem:[#allocation4 + $0x24] sm:$0x3] }
  0x52   :  { %v2256_v30 = vunpack.c.l.bf16 %v95_v19  ;;  %v212_v33 = vcombine.low %v148_v17, %v149_v21  ;;  %v151_v35 = vmul.f32 %v2250_v24, %v2250_v24  ;;  %v2260_v36 = vunpack.c.l.bf16 %v92_v20  ;;  %v103_v47 = vld [vmem:[#allocation4 + $0x26] sm:$0x3]  ;;  %v100_v48 = vld [vmem:[#allocation4 + $0x20] sm:$0x3]  ;;  %v101_v51 = vld [vmem:[#allocation4 + $0x22] sm:$0x3] }
  0x53   :  { %v215_v34 = vcombine.low %v154_v22, %v155_v23  ;;  %248 = vadd.xlane.f32.xlu1 %v214_v27  ;;  %v158_v38 = vmul.f32 %v2254_v29, %v2254_v29  ;;  %v2266_v40 = vunpack.c.l.bf16 %v93_v25  ;;  %v2268_v41 = vunpack.c.l.bf16 %v98_v26  ;;  %v106_v52 = vld [vmem:[#allocation4 + $0x2c] sm:$0x3]  ;;  %v107_v53 = vld [vmem:[#allocation4 + $0x2e] sm:$0x3]  ;;  %v104_v56 = vld [vmem:[#allocation4 + $0x28] sm:$0x3] }
  0x54   :  { %v159_v39 = vmul.f32 %v2256_v30, %v2256_v30  ;;  %244 = vadd.xlane.f32.xlu0 %v212_v33  ;;  %v213_v42 = vcombine.low %v150_v28, %v151_v35  ;;  %v156_v43 = vmul.f32 %v2260_v36, %v2260_v36  ;;  %v2272_v44 = vunpack.c.l.bf16 %v99_v31  ;;  %v105_v57 = vld [vmem:[#allocation4 + $0x2a] sm:$0x3]  ;;  %v1844_v62 = vld [vmem:[#allocation7] sm:$0xff]   ;;  %v110_v7 = vld [vmem:[#allocation4 + $0x34] sm:$0x3] }
  0x55   :  { %v2274_v45 = vunpack.c.l.bf16 %v96_v32  ;;  %v157_v49 = vmul.f32 %v2266_v40, %v2266_v40  ;;  %v2278_v50 = vunpack.c.l.bf16 %v97_v37  ;;  %v162_v54 = vmul.f32 %v2268_v41, %v2268_v41  ;;  %v1845_v5 = vld [vmem:[#allocation9] sm:$0xff]   ;;  %1721 = vmatprep.subr.bf16.mxu0 %v1844_v62  ;;  %v111_v14 = vld [vmem:[#allocation4 + $0x36] sm:$0x3]  ;;  %v108_v20 = vld [vmem:[#allocation4 + $0x30] sm:$0x3] }
  0x56   :  { %v163_v55 = vmul.f32 %v2272_v44, %v2272_v44  ;;  %v217_v58 = vcombine.low %v158_v38, %v159_v39  ;;  %v2286_v60 = vunpack.c.l.bf16 %v102_v46  ;;  %v2288_v61 = vunpack.c.l.bf16 %v103_v47  ;;  %1753 = vmatprep.subr.bf16.mxu1 %v1845_v5  ;;  %1722 = vmatpush3.bf16.msra.mxu0 %v1844_v62  ;;  %v109_v21 = vld [vmem:[#allocation4 + $0x32] sm:$0x3]  ;;  %v114_v31 = vld [vmem:[#allocation4 + $0x3c] sm:$0x3]  ;;  %v115_v32 = vld [vmem:[#allocation4 + $0x3e] sm:$0x3] }
  0x57   :  { %250 = vadd.xlane.f32.xlu1 %v215_v34  ;;  %v160_v59 = vmul.f32 %v2274_v45, %v2274_v45  ;;  %v216_v63 = vcombine.low %v156_v43, %v157_v49  ;;  %v161_v0 = vmul.f32 %v2278_v50, %v2278_v50  ;;  %v2292_v1 = vunpack.c.l.bf16 %v100_v48  ;;  %1754 = vmatpush3.bf16.msra.mxu1 %v1845_v5  ;;  %v112_v38 = vld [vmem:[#allocation4 + $0x38] sm:$0x3]  ;;  %v113_v39 = vld [vmem:[#allocation4 + $0x3a] sm:$0x3]  ;;  %v1846_v49 = vld [vmem:[#allocation7 + $0x8] sm:$0xff]  }
  0x58   :  { %246 = vadd.xlane.f32.xlu0 %v213_v42  ;;  %v2294_v2 = vunpack.c.l.bf16 %v101_v51  ;;  %v219_v8 = vcombine.low %v162_v54, %v163_v55  ;;  %v2296_v12 = vunpack.c.l.bf16 %v106_v52  ;;  %v2298_v13 = vunpack.c.l.bf16 %v107_v53  ;;  %v1847_v51 = vld [vmem:[#allocation9 + $0x8] sm:$0xff]   ;;  %1723 = vmatprep.subr.bf16.mxu0 %v1846_v49  ;;  %v1848_v62 = vld [vmem:[#allocation7 + $0x10] sm:$0xff]  }
  0x59   :  { %v166_v15 = vmul.f32 %v2286_v60, %v2286_v60  ;;  %v167_v16 = vmul.f32 %v2288_v61, %v2288_v61  ;;  %v2304_v17 = vunpack.c.l.bf16 %v104_v56  ;;  %v2306_v19 = vunpack.c.l.bf16 %v105_v57  ;;  %1755 = vmatprep.subr.bf16.mxu1 %v1847_v51 }
  0x5a   :  { %v218_v22 = vcombine.low %v160_v59, %v161_v0  ;;  %v164_v23 = vmul.f32 %v2292_v1, %v2292_v1  ;;  %v165_v25 = vmul.f32 %v2294_v2, %v2294_v2  ;;  %v170_v26 = vmul.f32 %v2296_v12, %v2296_v12  ;;  %1724 = vmatpush3.bf16.msra.mxu0 %v1846_v49 }
  0x5b   :  { %254 = vadd.xlane.f32.xlu1 %v217_v58  ;;  %v171_v27 = vmul.f32 %v2298_v13, %v2298_v13  ;;  %v2316_v28 = vunpack.c.l.bf16 %v110_v7  ;;  %v221_v33 = vcombine.low %v166_v15, %v167_v16  ;;  %v168_v34 = vmul.f32 %v2304_v17, %v2304_v17  ;;  %1756 = vmatpush3.bf16.msra.mxu1 %v1847_v51  ;;  %v1850_v16 = vld [vmem:[#allocation7 + $0x18] sm:$0xff]  }
  0x5c   :  { %252 = vadd.xlane.f32.xlu0 %v216_v63  ;;  %v169_v35 = vmul.f32 %v2306_v19, %v2306_v19  ;;  %v2322_v37 = vunpack.c.l.bf16 %v111_v14  ;;  %v220_v42 = vcombine.low %v164_v23, %v165_v25  ;;  %v2324_v43 = vunpack.c.l.bf16 %v108_v20  ;;  %v1849_v63 = vld [vmem:[#allocation9 + $0x10] sm:$0xff]   ;;  %1725 = vmatprep.subr.bf16.mxu0 %v1848_v62  ;;  %v1851_v20 = vld [vmem:[#allocation9 + $0x18] sm:$0xff]   ;;  %v1852_v23 = vld [vmem:[#allocation7 + $0x20] sm:$0xff]  }
  0x5d   :  { %v2326_v46 = vunpack.c.l.bf16 %v109_v21  ;;  %v223_v47 = vcombine.low %v170_v26, %v171_v27  ;;  %v174_v48 = vmul.f32 %v2316_v28, %v2316_v28  ;;  %v2332_v54 = vunpack.c.l.bf16 %v114_v31  ;;  %1757 = vmatprep.subr.bf16.mxu1 %v1849_v63  ;;  %v1853_v25 = vld [vmem:[#allocation9 + $0x20] sm:$0xff]   ;;  %v1854_v26 = vld [vmem:[#allocation7 + $0x28] sm:$0xff]   ;;  %v1856_v31 = vld [vmem:[#allocation7 + $0x30] sm:$0xff]  }
  0x5e   :  { %v222_v52 = vcombine.low %v168_v34, %v169_v35  ;;  %v175_v53 = vmul.f32 %v2322_v37, %v2322_v37  ;;  %v2334_v55 = vunpack.c.l.bf16 %v115_v32  ;;  %v172_v56 = vmul.f32 %v2324_v43, %v2324_v43  ;;  %1726 = vmatpush3.bf16.msra.mxu0 %v1848_v62  ;;  %v1855_v27 = vld [vmem:[#allocation9 + $0x28] sm:$0xff]   ;;  %v1857_v32 = vld [vmem:[#allocation9 + $0x30] sm:$0xff]   ;;  %v1859_v34 = vld [vmem:[#allocation9 + $0x38] sm:$0xff]  }
  0x5f   :  { %258 = vadd.xlane.f32.xlu1 %v219_v8  ;;  %v173_v57 = vmul.f32 %v2326_v46, %v2326_v46  ;;  %v2340_v58 = vunpack.c.l.bf16 %v112_v38  ;;  %v2342_v59 = vunpack.c.l.bf16 %v113_v39  ;;  %v178_v5 = vmul.f32 %v2332_v54, %v2332_v54  ;;  %1758 = vmatpush3.bf16.msra.mxu1 %v1849_v63 }
  0x60   :  { %256 = vadd.xlane.f32.xlu0 %v218_v22  ;;  %v225_v0 = vcombine.low %v174_v48, %v175_v53  ;;  %v179_v7 = vmul.f32 %v2334_v55, %v2334_v55  ;;  %1727 = vmatprep.subr.bf16.mxu0 %v1850_v16  ;;  %v2122_v51 = vmov 839922192   ;;  %v344_v53 = vlaneseq }
  0x61   :  { %v224_v8 = vcombine.low %v172_v56, %v173_v57  ;;  %v176_v14 = vmul.f32 %v2340_v58, %v2340_v58  ;;  %v177_v15 = vmul.f32 %v2342_v59, %v2342_v59  ;;  %1759 = vmatprep.subr.bf16.mxu1 %v1851_v20  ;;  %v2123_v56 = vmov 1985246804  }
  0x62   :  { %v227_v21 = vcombine.low %v178_v5, %v179_v7  ;;  %1728 = vmatpush3.bf16.msra.mxu0 %v1850_v16  ;;  %v349_v57 = vunpack.c.l.s4 %v2123_v56 }
  0x63   :  { %262 = vadd.xlane.f32.xlu1 %v221_v33  ;;  %v226_v22 = vcombine.low %v176_v14, %v177_v15  ;;  %1760 = vmatpush3.bf16.msra.mxu1 %v1851_v20  ;;  %v1858_v33 = vld [vmem:[#allocation7 + $0x38] sm:$0xff]   ;;  %v345_v15 = vshrl.u32 %v344_v53, 7 }
  0x64   :  { %260 = vadd.xlane.f32.xlu0 %v220_v42  ;;  %1729 = vmatprep.subr.bf16.mxu0 %v1852_v23  ;;  %v350_v16 = vunpack.c.0.s8 %v349_v57 }
  0x65   :  { %1761 = vmatprep.subr.bf16.mxu1 %v1853_v25 }
  0x66   :  { %1730 = vmatpush3.bf16.msra.mxu0 %v1852_v23 }
  0x67   :  { %266 = vadd.xlane.f32.xlu1 %v223_v47  ;;  %1762 = vmatpush3.bf16.msra.mxu1 %v1853_v25 }
  0x68   :  { %264 = vadd.xlane.f32.xlu0 %v222_v52  ;;  %1731 = vmatprep.subr.bf16.mxu0 %v1854_v26  ;;  %v342_v52 = vunpack.c.l.s4 %v2122_v51 }
  0x69   :  { %1763 = vmatprep.subr.bf16.mxu1 %v1855_v27 }
  0x6a   :  { %1732 = vmatpush3.bf16.msra.mxu0 %v1854_v26  ;;  %v343_v14 = vunpack.c.0.s8 %v342_v52 }
  0x6b   :  { %270 = vadd.xlane.f32.xlu1 %v225_v0  ;;  %1764 = vmatpush3.bf16.msra.mxu1 %v1855_v27 }
  0x6c   :  { %268 = vadd.xlane.f32.xlu0 %v224_v8  ;;  %1733 = vmatprep.subr.bf16.mxu0 %v1856_v31  ;;  %v2352_v27 = vsub.s32 %v343_v14, %v345_v15 }
  0x6d   :  { %1765 = vmatprep.subr.bf16.mxu1 %v1857_v32 }
  0x6e   :  { %1734 = vmatpush3.bf16.msra.mxu0 %v1856_v31  ;;  %v2354_v31 = vsub.s32 %v350_v16, %v345_v15 }
  0x6f   :  { %274 = vadd.xlane.f32.xlu1 %v227_v21  ;;  %1766 = vmatpush3.bf16.msra.mxu1 %v1857_v32 }
  0x70   :  { %272 = vadd.xlane.f32.xlu0 %v226_v22  ;;  %1735 = vmatprep.subr.bf16.mxu0 %v1858_v33 }
  0x71   :  { %1767 = vmatprep.subr.bf16.mxu1 %v1859_v34 }
  0x72   :  { %1736 = vmatpush3.bf16.msra.mxu0 %v1858_v33 }
  0x73   :  { %1768 = vmatpush3.bf16.msra.mxu1 %v1859_v34 }
  0xe0   :  { %v249_v35 = vpop.xlane.xlu1 %248 }
  0xe1   :  { %v279_v38 = vmul.f32 0.0078125, %v249_v35  ;;  %v245_v39 = vpop.xlane.xlu0 %244 }
  0xe2   :  { %v277_v42 = vmul.f32 0.0078125, %v245_v39  ;;  %v2359_v39 = vld [vmem:[%s2686_s1] ss:$0 sm:$0xff] }
  0xe3   :  { %v295_v47 = vadd.f32 1e-06, %v279_v38 }
  0xe4   :  { %v293_v48 = vadd.f32 1e-06, %v277_v42  ;;  %v251_v49 = vpop.xlane.xlu1 %250 }
  0xe5   :  { %1868 = vrsqrt.f32 %v295_v47  ;;  %v280_v62 = vmul.f32 0.0078125, %v251_v49  ;;  %v247_v63 = vpop.xlane.xlu0 %246 }
  0xe6   :  { %1870 = vrsqrt.f32 %v293_v48  ;;  %v278_v0 = vmul.f32 0.0078125, %v247_v63  ;;  %v2367_v63 = vcombine.high %v2359_v39, %v2359_v39 }
  0xe7   :  { %v296_v5 = vadd.f32 1e-06, %v280_v62 }
  0xe8   :  { %v294_v7 = vadd.f32 1e-06, %v278_v0  ;;  %v255_v8 = vpop.xlane.xlu1 %254 }
  0xe9   :  { %1872 = vrsqrt.f32 %v296_v5  ;;  %v282_v20 = vmul.f32 0.0078125, %v255_v8  ;;  %v253_v21 = vpop.xlane.xlu0 %252 }
  0xea   :  { %1874 = vrsqrt.f32 %v294_v7  ;;  %v281_v22 = vmul.f32 0.0078125, %v253_v21 }
  0xeb   :  { %v298_v23 = vadd.f32 1e-06, %v282_v20 }
  0xec   :  { %v297_v25 = vadd.f32 1e-06, %v281_v22  ;;  %v259_v26 = vpop.xlane.xlu1 %258 }
  0xed   :  { %v284_v32 = vmul.f32 0.0078125, %v259_v26  ;;  %v257_v33 = vpop.xlane.xlu0 %256 }
  0xee   :  { %1876 = vrsqrt.f32 %v297_v25  ;;  %v283_v34 = vmul.f32 0.0078125, %v257_v33 }
  0xef   :  { %v1869_v35 = vpop.eup %1868  ;;  %1878 = vrsqrt.f32 %v298_v23  ;;  %v300_v38 = vadd.f32 1e-06, %v284_v32 }
  0xf0   :  { %v1871_v42 = vpop.eup %1870  ;;  %v299_v47 = vadd.f32 1e-06, %v283_v34  ;;  %v263_v48 = vpop.xlane.xlu1 %262  ;;  %v375_v49 = vrot.slane %v1869_v35, %v2352_v27  ;;  %v382_v51 = vrot.slane %v1869_v35, %v2354_v31 }
  0xf1   :  { %1880 = vrsqrt.f32 %v300_v38  ;;  %v286_v52 = vmul.f32 0.0078125, %v263_v48  ;;  %v261_v53 = vpop.xlane.xlu0 %260  ;;  %v347_v56 = vrot.slane %v1871_v42, %v2352_v27  ;;  %v354_v57 = vrot.slane %v1871_v42, %v2354_v31 }
  0xf2   :  { %1882 = vrsqrt.f32 %v299_v47  ;;  %v285_v62 = vmul.f32 0.0078125, %v261_v53  ;;  %v601_v0 = vmul.f32 %v375_v49, %v2224_v3  ;;  %v602_v15 = vmul.f32 %v382_v51, %v2226_v4 }
  0xf3   :  { %v1873_v5 = vpop.eup %1872  ;;  %v302_v7 = vadd.f32 1e-06, %v286_v52  ;;  %v597_v8 = vmul.f32 %v347_v56, %v2228_v6  ;;  %v598_v14 = vmul.f32 %v354_v57, %v2230_v9 }
  0xf4   :  { %v1875_v16 = vpop.eup %1874  ;;  %v301_v20 = vadd.f32 1e-06, %v285_v62  ;;  %v267_v21 = vpop.xlane.xlu1 %266  ;;  %v389_v22 = vrot.slane %v1873_v5, %v2352_v27  ;;  %v396_v23 = vrot.slane %v1873_v5, %v2354_v31  ;;  %v642_v25 = vmul.f32 %v2359_v39, %v601_v0 }
  0xf5   :  { %1884 = vrsqrt.f32 %v302_v7  ;;  %v288_v26 = vmul.f32 0.0078125, %v267_v21  ;;  %v265_v3 = vpop.xlane.xlu0 %264  ;;  %v361_v32 = vrot.slane %v1875_v16, %v2352_v27  ;;  %v368_v6 = vrot.slane %v1875_v16, %v2354_v31 }
  0xf6   :  { %1886 = vrsqrt.f32 %v301_v20  ;;  %v287_v9 = vmul.f32 0.0078125, %v265_v3  ;;  %v638_v4 = vmul.f32 %v2359_v39, %v597_v8  ;;  %v639_v33 = vmul.f32 %v2367_v63, %v598_v14 }
  0xf7   :  { %v304_v34 = vadd.f32 1e-06, %v288_v26  ;;  %v599_v35 = vmul.f32 %v361_v32, %v2242_v18  ;;  %v600_v38 = vmul.f32 %v368_v6, %v2250_v24  ;;  %v603_v42 = vmul.f32 %v389_v22, %v2232_v10 }
  0xf8   :  { %v1877_v47 = vpop.eup %1876  ;;  %v303_v48 = vadd.f32 1e-06, %v287_v9  ;;  %v271_v49 = vpop.xlane.xlu1 %270  ;;  %v702_v51 = vcombine.low %v638_v4, %v639_v33  ;;  %v604_v52 = vmul.f32 %v396_v23, %v2234_v11  ;;  %v643_v53 = vmul.f32 %v2367_v63, %v602_v15 }
  0xf9   :  { %v1879_v56 = vpop.eup %1878  ;;  %1888 = vrsqrt.f32 %v304_v34  ;;  %v290_v57 = vmul.f32 0.0078125, %v271_v49  ;;  %v269_v62 = vpop.xlane.xlu0 %268  ;;  %v640_v0 = vmul.f32 %v2359_v39, %v599_v35  ;;  %v641_v18 = vmul.f32 %v2367_v63, %v600_v38 }
  0xfa   :  { %1890 = vrsqrt.f32 %v303_v48  ;;  %v289_v24 = vmul.f32 0.0078125, %v269_v62  ;;  %v644_v10 = vmul.f32 %v2359_v39, %v603_v42  ;;  %v645_v5 = vmul.f32 %v2367_v63, %v604_v52 }
  0xfb   :  { %v1881_v7 = vpop.eup %1880  ;;  %v306_v8 = vadd.f32 1e-06, %v290_v57  ;;  %v703_v14 = vcombine.low %v640_v0, %v641_v18  ;;  %v704_v11 = vcombine.low %v642_v25, %v643_v53  ;;  %v403_v15 = vrot.slane %v1877_v47, %v2352_v27 }
  0xfc   :  { %v1883_v16 = vpop.eup %1882  ;;  %v305_v20 = vadd.f32 1e-06, %v289_v24  ;;  %v275_v21 = vpop.xlane.xlu1 %274  ;;  %v705_v22 = vcombine.low %v644_v10, %v645_v5  ;;  %v410_v23 = vrot.slane %v1877_v47, %v2354_v31  ;;  %v417_v26 = vrot.slane %v1879_v56, %v2352_v27 }
  0xfd   :  { %1892 = vrsqrt.f32 %v306_v8  ;;  %v292_v3 = vmul.f32 0.0078125, %v275_v21  ;;  %v273_v32 = vpop.xlane.xlu0 %272  ;;  %v734_v6 = vpack.c.bf16 %v703_v14, %v702_v51  ;;  %v424_v9 = vrot.slane %v1879_v56, %v2354_v31 }
  0xfe   :  { %1894 = vrsqrt.f32 %v305_v20  ;;  %v291_v4 = vmul.f32 0.0078125, %v273_v32  ;;  %v735_v33 = vpack.c.bf16 %v705_v22, %v704_v11  ;;  %v605_v25 = vmul.f32 %v403_v15, %v2260_v36 }
  0xff   :  { %v1885_v34 = vpop.eup %1884  ;;  %v308_v35 = vadd.f32 1e-06, %v292_v3  ;;  %1737 = vmatprep.mubr.bf16.mxu0 %v734_v6  ;;  %1769 = vmatprep.mubr.bf16.mxu1 %v734_v6  ;;  %v606_v38 = vmul.f32 %v410_v23, %v2266_v40  ;;  %v607_v42 = vmul.f32 %v417_v26, %v2254_v29  ;;  %v608_v47 = vmul.f32 %v424_v9, %v2256_v30 }
 0x100   :  { %v1887_v48 = vpop.eup %1886  ;;  %v307_v49 = vadd.f32 1e-06, %v291_v4  ;;  %1738 = vmatmul.mubr.bf16.vlgmr.msra.gmra.mrb[0].mxu0 %v735_v33  ;;  %1770 = vmatmul.mubr.bf16.vlgmr.msra.gmra.mrb[0].mxu1 %v735_v33  ;;  %v646_v51 = vmul.f32 %v2359_v39, %v605_v25  ;;  %v431_v52 = vrot.slane %v1883_v16, %v2352_v27  ;;  %v438_v36 = vrot.slane %v1883_v16, %v2354_v31 }
 0x101   :  { %1896 = vrsqrt.f32 %v308_v35  ;;  %v647_v53 = vmul.f32 %v2367_v63, %v606_v38  ;;  %v648_v56 = vmul.f32 %v2359_v39, %v607_v42  ;;  %v649_v40 = vmul.f32 %v2367_v63, %v608_v47 }
 0x102   :  { %1898 = vrsqrt.f32 %v307_v49  ;;  %v445_v29 = vrot.slane %v1881_v7, %v2352_v27  ;;  %v452_v30 = vrot.slane %v1881_v7, %v2354_v31  ;;  %v609_v57 = vmul.f32 %v431_v52, %v2274_v45 }
 0x103   :  { %v1889_v62 = vpop.eup %1888  ;;  %v706_v0 = vcombine.low %v646_v51, %v647_v53  ;;  %v707_v18 = vcombine.low %v648_v56, %v649_v40  ;;  %v610_v24 = vmul.f32 %v438_v36, %v2278_v50  ;;  %v459_v10 = vrot.slane %v1887_v48, %v2352_v27 }
 0x104   :  { %v1891_v5 = vpop.eup %1890  ;;  %v611_v8 = vmul.f32 %v445_v29, %v2268_v41  ;;  %v612_v14 = vmul.f32 %v452_v30, %v2272_v44  ;;  %v650_v11 = vmul.f32 %v2359_v39, %v609_v57  ;;  %v466_v15 = vrot.slane %v1887_v48, %v2354_v31 }
 0x105   :  { %v736_v16 = vpack.c.bf16 %v707_v18, %v706_v0  ;;  %v651_v7 = vmul.f32 %v2367_v63, %v610_v24  ;;  %v473_v45 = vrot.slane %v1885_v34, %v2352_v27  ;;  %v480_v20 = vrot.slane %v1885_v34, %v2354_v31 }
 0x106   :  { %v652_v50 = vmul.f32 %v2359_v39, %v611_v8  ;;  %v653_v21 = vmul.f32 %v2367_v63, %v612_v14  ;;  %v613_v22 = vmul.f32 %v459_v10, %v2292_v1  ;;  %v614_v41 = vmul.f32 %v466_v15, %v2294_v2 }
 0x107   :  { %v1893_v44 = vpop.eup %1892  ;;  %1741 = vmatprep.mubr.bf16.mxu0 %v736_v16  ;;  %1773 = vmatprep.mubr.bf16.mxu1 %v736_v16  ;;  %v708_v23 = vcombine.low %v650_v11, %v651_v7  ;;  %v615_v26 = vmul.f32 %v473_v45, %v2286_v60  ;;  %v616_v3 = vmul.f32 %v480_v20, %v2288_v61 }
 0x108   :  { %v1895_v32 = vpop.eup %1894  ;;  %v709_v6 = vcombine.low %v652_v50, %v653_v21  ;;  %v654_v9 = vmul.f32 %v2359_v39, %v613_v22  ;;  %v655_v4 = vmul.f32 %v2367_v63, %v614_v41  ;;  %v487_v33 = vrot.slane %v1891_v5, %v2352_v27 }
 0x109   :  { %v656_v1 = vmul.f32 %v2359_v39, %v615_v26  ;;  %v657_v2 = vmul.f32 %v2367_v63, %v616_v3  ;;  %v494_v25 = vrot.slane %v1891_v5, %v2354_v31  ;;  %v501_v34 = vrot.slane %v1889_v62, %v2352_v27  ;;  %v1865_v26 = vld [vmem:[#allocation10 + $0x28] sm:$0xff]   ;;  %v1866_v3 = vld [vmem:[#allocation10 + $0x30] sm:$0xff]  }
 0x10a   :  { %v737_v35 = vpack.c.bf16 %v709_v6, %v708_v23  ;;  %v710_v60 = vcombine.low %v654_v9, %v655_v4  ;;  %v508_v61 = vrot.slane %v1889_v62, %v2354_v31  ;;  %v617_v38 = vmul.f32 %v487_v33, %v2304_v17  ;;  %v1864_v23 = vld [vmem:[#allocation10 + $0x20] sm:$0xff]  }
 0x10b   :  { %v1897_v42 = vpop.eup %1896  ;;  %v711_v47 = vcombine.low %v656_v1, %v657_v2  ;;  %v618_v48 = vmul.f32 %v494_v25, %v2306_v19  ;;  %v619_v49 = vmul.f32 %v501_v34, %v2296_v12  ;;  %v515_v51 = vrot.slane %v1895_v32, %v2352_v27 }
 0x10c   :  { %v1899_v52 = vpop.eup %1898  ;;  %1742 = vmatmul.mubr.bf16.gmra.mrb[4].mxu0 %v737_v35  ;;  %1774 = vmatmul.mubr.bf16.gmra.mrb[4].mxu1 %v737_v35  ;;  %v620_v36 = vmul.f32 %v508_v61, %v2298_v13  ;;  %v658_v53 = vmul.f32 %v2359_v39, %v617_v38  ;;  %v522_v56 = vrot.slane %v1895_v32, %v2354_v31  ;;  %v1867_v32 = vld [vmem:[#allocation10 + $0x38] sm:$0xff]  }
 0x10d   :  { %v738_v40 = vpack.c.bf16 %v711_v47, %v710_v60  ;;  %v659_v17 = vmul.f32 %v2367_v63, %v618_v48  ;;  %v660_v29 = vmul.f32 %v2359_v39, %v619_v49  ;;  %v529_v19 = vrot.slane %v1893_v44, %v2352_v27 }
 0x10e   :  { %v661_v12 = vmul.f32 %v2367_v63, %v620_v36  ;;  %v536_v30 = vrot.slane %v1893_v44, %v2354_v31  ;;  %v621_v57 = vmul.f32 %v515_v51, %v2324_v43  ;;  %v622_v62 = vmul.f32 %v522_v56, %v2326_v46 }
 0x10f   :  { %1745 = vmatprep.mubr.bf16.mxu0 %v738_v40  ;;  %1777 = vmatprep.mubr.bf16.mxu1 %v738_v40  ;;  %v712_v13 = vcombine.low %v658_v53, %v659_v17  ;;  %v623_v0 = vmul.f32 %v529_v19, %v2316_v28  ;;  %v543_v18 = vrot.slane %v1899_v52, %v2352_v27 }
 0x110   :  { %v713_v24 = vcombine.low %v660_v29, %v661_v12  ;;  %v624_v10 = vmul.f32 %v536_v30, %v2322_v37  ;;  %v662_v5 = vmul.f32 %v2359_v39, %v621_v57  ;;  %v663_v8 = vmul.f32 %v2367_v63, %v622_v62 }
 0x111   :  { %v664_v14 = vmul.f32 %v2359_v39, %v623_v0  ;;  %v550_v43 = vrot.slane %v1899_v52, %v2354_v31  ;;  %v557_v46 = vrot.slane %v1897_v42, %v2352_v27  ;;  %v564_v11 = vrot.slane %v1897_v42, %v2354_v31 }
 0x112   :  { %v739_v15 = vpack.c.bf16 %v713_v24, %v712_v13  ;;  %v665_v28 = vmul.f32 %v2367_v63, %v624_v10  ;;  %v714_v16 = vcombine.low %v662_v5, %v663_v8  ;;  %v625_v7 = vmul.f32 %v543_v18, %v2340_v58 }
 0x113   :  { %v626_v37 = vmul.f32 %v550_v43, %v2342_v59  ;;  %v627_v45 = vmul.f32 %v557_v46, %v2332_v54  ;;  %v628_v20 = vmul.f32 %v564_v11, %v2334_v55  ;;  %v1860_v54 = vld [vmem:[#allocation10] sm:$0xff]   ;;  %v1861_v55 = vld [vmem:[#allocation10 + $0x8] sm:$0xff]  }
 0x114   :  { %1746 = vmatmul.mubr.bf16.gmra.mrb[8].mxu0 %v739_v15  ;;  %1778 = vmatmul.mubr.bf16.gmra.mrb[8].mxu1 %v739_v15  ;;  %v715_v50 = vcombine.low %v664_v14, %v665_v28  ;;  %v666_v21 = vmul.f32 %v2359_v39, %v625_v7 }
 0x115   :  { %v667_v27 = vmul.f32 %v2367_v63, %v626_v37  ;;  %v668_v31 = vmul.f32 %v2359_v39, %v627_v45  ;;  %v669_v22 = vmul.f32 %v2367_v63, %v628_v20  ;;  %1785 = vmatprep.subr.bf16.mxu0 %v1860_v54  ;;  %1817 = vmatprep.subr.bf16.mxu1 %v1860_v54  ;;  %v1862_v39 = vld [vmem:[#allocation10 + $0x10] sm:$0xff]   ;;  %v1863_v63 = vld [vmem:[#allocation10 + $0x18] sm:$0xff]  }
 0x116   :  { %v740_v41 = vpack.c.bf16 %v715_v50, %v714_v16  ;;  %1786 = vmatpush3.bf16.msra.mxu0 %v1860_v54  ;;  %1825 = vmatpush3.bf16.msra.mxu1 %v1860_v54 }
 0x117   :  { %v716_v44 = vcombine.low %v666_v21, %v667_v27  ;;  %v717_v58 = vcombine.low %v668_v31, %v669_v22  ;;  %1787 = vmatprep.subr.bf16.mxu0 %v1861_v55  ;;  %1818 = vmatprep.subr.bf16.mxu1 %v1861_v55 }
 0x118   :  { %1749 = vmatprep.mubr.bf16.mxu0 %v740_v41  ;;  %1781 = vmatprep.mubr.bf16.mxu1 %v740_v41 }
 0x119   :  { %v741_v59 = vpack.c.bf16 %v717_v58, %v716_v44 }
 0x11a   :  { %1788 = vmatpush3.bf16.msra.mxu0 %v1861_v55  ;;  %1826 = vmatpush3.bf16.msra.mxu1 %v1861_v55 }
 0x11b   :  { %1789 = vmatprep.subr.bf16.mxu0 %v1862_v39  ;;  %1819 = vmatprep.subr.bf16.mxu1 %v1862_v39 }
 0x11c   :  { %1750 = vmatmul.mubr.bf16.gmra.mrb[12].mxu0 %v741_v59  ;;  %1782 = vmatmul.mubr.bf16.gmra.mrb[12].mxu1 %v741_v59 }
 0x11e   :  { %1790 = vmatpush3.bf16.msra.mxu0 %v1862_v39  ;;  %1827 = vmatpush3.bf16.msra.mxu1 %v1862_v39 }
 0x11f   :  { %1791 = vmatprep.subr.bf16.mxu0 %v1863_v63  ;;  %1820 = vmatprep.subr.bf16.mxu1 %v1863_v63 }
 0x122   :  { %1792 = vmatpush3.bf16.msra.mxu0 %v1863_v63  ;;  %1828 = vmatpush3.bf16.msra.mxu1 %v1863_v63 }
 0x123   :  { %1793 = vmatprep.subr.bf16.mxu0 %v1864_v23  ;;  %1821 = vmatprep.subr.bf16.mxu1 %v1864_v23 }
 0x126   :  { %1794 = vmatpush3.bf16.msra.mxu0 %v1864_v23  ;;  %1829 = vmatpush3.bf16.msra.mxu1 %v1864_v23 }
 0x127   :  { %1795 = vmatprep.subr.bf16.mxu0 %v1865_v26  ;;  %1822 = vmatprep.subr.bf16.mxu1 %v1865_v26 }
 0x12a   :  { %1796 = vmatpush3.bf16.msra.mxu0 %v1865_v26  ;;  %1830 = vmatpush3.bf16.msra.mxu1 %v1865_v26 }
 0x12b   :  { %1797 = vmatprep.subr.bf16.mxu0 %v1866_v3  ;;  %1823 = vmatprep.subr.bf16.mxu1 %v1866_v3 }
 0x12e   :  { %1798 = vmatpush3.bf16.msra.mxu0 %v1866_v3  ;;  %1831 = vmatpush3.bf16.msra.mxu1 %v1866_v3 }
 0x12f   :  { %1799 = vmatprep.subr.bf16.mxu0 %v1867_v32  ;;  %1824 = vmatprep.subr.bf16.mxu1 %v1867_v32 }
 0x132   :  { %1800 = vmatpush3.bf16.msra.mxu0 %v1867_v32  ;;  %1832 = vmatpush3.bf16.msra.mxu1 %v1867_v32 }
 0x1d3   :  { %v2461_v6 = vpop.f32.mrb[0].mxu0  ;;  %v2463_v9 = vpop.f32.mrb[0].mxu1 }
 0x1d4   :  { %v1650_v4 = vmul.f32 -1.442695, %v2463_v9  ;;  %v2466_v33 = vpop.f32.mrb[1].mxu0  ;;  %v1033_v1 = vpop.f32.mrb[1].mxu1 }
 0x1d5   :  { %v1648_v2 = vmul.f32 -1.442695, %v1033_v1  ;;  %v2468_v25 = vpop.f32.mrb[2].mxu0  ;;  %v2470_v34 = vpop.f32.mrb[2].mxu1 }
 0x1d6   :  { %1900 = vpow2.f32 %v1650_v4  ;;  %v1651_v35 = vmul.f32 -1.442695, %v2470_v34  ;;  %v2473_v60 = vpop.f32.mrb[3].mxu0  ;;  %v2475_v61 = vpop.f32.mrb[3].mxu1 }
 0x1d7   :  { %1902 = vpow2.f32 %v1648_v2  ;;  %v1649_v38 = vmul.f32 -1.442695, %v2475_v61 }
 0x1d8   :  { %1904 = vpow2.f32 %v1651_v35 }
 0x1d9   :  { %1906 = vpow2.f32 %v1649_v38 }
 0x1df   :  { %v2478_v42 = vpop.f32.mrb[4].mxu0  ;;  %v2480_v47 = vpop.f32.mrb[4].mxu1 }
 0x1e0   :  { %v1901_v48 = vpop.eup %1900  ;;  %v1654_v49 = vmul.f32 -1.442695, %v2480_v47  ;;  %v2483_v51 = vpop.f32.mrb[5].mxu0 }
 0x1e1   :  { %v2485_v52 = vpop.f32.mrb[5].mxu1  ;;  %v1903_v36 = vpop.eup %1902  ;;  %v1146_v53 = vadd.f32 1.0, %v1901_v48 }
 0x1e2   :  { %v2487_v56 = vpop.f32.mrb[6].mxu0  ;;  %v2489_v40 = vpop.f32.mrb[6].mxu1  ;;  %v1144_v29 = vadd.f32 1.0, %v1903_v36  ;;  %1908 = vpow2.f32 %v1654_v49  ;;  %v1652_v62 = vmul.f32 -1.442695, %v2485_v52 }
 0x1e3   :  { %v1905_v17 = vpop.eup %1904  ;;  %v2491_v19 = vpop.f32.mrb[7].mxu0  ;;  %1910 = vrcp.f32 %v1146_v53  ;;  %v1655_v0 = vmul.f32 -1.442695, %v2489_v40 }
 0x1e4   :  { %v2493_v12 = vpop.f32.mrb[7].mxu1  ;;  %v1907_v30 = vpop.eup %1906  ;;  %v1147_v57 = vadd.f32 1.0, %v1905_v17  ;;  %1912 = vrcp.f32 %v1144_v29 }
 0x1e5   :  { %v1145_v13 = vadd.f32 1.0, %v1907_v30  ;;  %v1653_v18 = vmul.f32 -1.442695, %v2493_v12 }
 0x1e6   :  { %1914 = vrcp.f32 %v1147_v57 }
 0x1e7   :  { %1916 = vrcp.f32 %v1145_v13  ;;  %v2498_v24 = vpop.f32.mrb[8].mxu0  ;;  %v2500_v10 = vpop.f32.mrb[8].mxu1 }
 0x1e8   :  { %1918 = vpow2.f32 %v1652_v62  ;;  %v1658_v5 = vmul.f32 -1.442695, %v2500_v10  ;;  %v2503_v8 = vpop.f32.mrb[9].mxu0  ;;  %v2505_v14 = vpop.f32.mrb[9].mxu1 }
 0x1e9   :  { %1920 = vpow2.f32 %v1655_v0  ;;  %v1656_v43 = vmul.f32 -1.442695, %v2505_v14  ;;  %v2508_v46 = vpop.f32.mrb[10].mxu0  ;;  %v2510_v11 = vpop.f32.mrb[10].mxu1 }
 0x1ea   :  { %1922 = vpow2.f32 %v1653_v18  ;;  %v1659_v15 = vmul.f32 -1.442695, %v2510_v11  ;;  %v2513_v28 = vpop.f32.mrb[11].mxu0  ;;  %v2515_v16 = vpop.f32.mrb[11].mxu1 }
 0x1eb   :  { %1924 = vpow2.f32 %v1658_v5  ;;  %v1657_v7 = vmul.f32 -1.442695, %v2515_v16 }
 0x1ec   :  { %1926 = vpow2.f32 %v1656_v43  ;;  %v1909_v37 = vpop.eup %1908 }
 0x1ed   :  { %1928 = vpow2.f32 %v1659_v15  ;;  %v1911_v45 = vpop.eup %1910  ;;  %v1150_v20 = vadd.f32 1.0, %v1909_v37 }
 0x1ee   :  { %1930 = vpow2.f32 %v1657_v7  ;;  %v1913_v50 = vpop.eup %1912  ;;  %v1194_v21 = vmul.f32 %v1911_v45, %v2463_v9 }
 0x1ef   :  { %v1192_v31 = vmul.f32 %v1913_v50, %v1033_v1  ;;  %1932 = vrcp.f32 %v1150_v20  ;;  %v2519_v22 = vpop.f32.mrb[12].mxu0  ;;  %v2521_v41 = vpop.f32.mrb[12].mxu1 }
 0x1f0   :  { %v1915_v27 = vpop.eup %1914  ;;  %v1210_v58 = vmul.f32 %v2461_v6, %v1194_v21  ;;  %v1662_v54 = vmul.f32 -1.442695, %v2521_v41  ;;  %v2526_v55 = vpop.f32.mrb[13].mxu0 }
 0x1f1   :  { %v1917_v44 = vpop.eup %1916  ;;  %v1195_v59 = vmul.f32 %v1915_v27, %v2470_v34  ;;  %v2528_v39 = vpop.f32.mrb[13].mxu1  ;;  %v1208_v23 = vmul.f32 %v1192_v31, %v2466_v33 }
 0x1f2   :  { %v1919_v63 = vpop.eup %1918  ;;  %v1193_v26 = vmul.f32 %v1917_v44, %v2475_v61  ;;  %v1660_v3 = vmul.f32 -1.442695, %v2528_v39  ;;  %v2533_v32 = vpop.f32.mrb[14].mxu0  ;;  %1934 = vpow2.f32 %v1662_v54 }
 0x1f3   :  { %v2535_v9 = vpop.f32.mrb[14].mxu1  ;;  %v1921_v6 = vpop.eup %1920  ;;  %v1211_v4 = vmul.f32 %v2468_v25, %v1195_v59  ;;  %v1148_v1 = vadd.f32 1.0, %v1919_v63 }
 0x1f4   :  { %v2538_v2 = vpop.f32.mrb[15].mxu0  ;;  %v2540_v34 = vpop.f32.mrb[15].mxu1  ;;  %v1209_v33 = vmul.f32 %v1193_v26, %v2473_v60  ;;  %v1151_v38 = vadd.f32 1.0, %v1921_v6  ;;  %1936 = vpow2.f32 %v1660_v3  ;;  %v1663_v62 = vmul.f32 -1.442695, %v2535_v9 }
 0x1f5   :  { %v1923_v35 = vpop.eup %1922  ;;  %v1241_v48 = vpack.c.bf16 %v1211_v4, %v1210_v58  ;;  %1938 = vrcp.f32 %v1148_v1  ;;  %v1661_v13 = vmul.f32 -1.442695, %v2540_v34 }
 0x1f6   :  { %v1925_v61 = vpop.eup %1924  ;;  %v1149_v49 = vadd.f32 1.0, %v1923_v35  ;;  %1940 = vrcp.f32 %v1151_v38  ;;  %v1240_v17 = vpack.c.bf16 %v1209_v33, %v1208_v23 }
 0x1f7   :  { %v1927_v36 = vpop.eup %1926  ;;  %v1154_v53 = vadd.f32 1.0, %v1925_v61 }
 0x1f8   :  { %v1929_v25 = vpop.eup %1928  ;;  %1942 = vrcp.f32 %v1149_v49  ;;  %v1152_v29 = vadd.f32 1.0, %v1927_v36  ;;  %1801 = vmatprep.mubr.bf16.mxu0 %v1240_v17 }
 0x1f9   :  { %v1931_v30 = vpop.eup %1930  ;;  %1944 = vrcp.f32 %v1154_v53  ;;  %v1155_v57 = vadd.f32 1.0, %v1929_v25  ;;  %1802 = vmatmul.mubr.bf16.vlgmr.msra.gmra.mrb[16].mxu0 %v1241_v48 }
 0x1fa   :  { %1946 = vrcp.f32 %v1152_v29  ;;  %v1153_v60 = vadd.f32 1.0, %v1931_v30  ;;  %v1933_v0 = vpop.eup %1932 }
 0x1fb   :  { %1948 = vrcp.f32 %v1155_v57  ;;  %v1198_v18 = vmul.f32 %v1933_v0, %v2480_v47 }
 0x1fc   :  { %1950 = vrcp.f32 %v1153_v60  ;;  %v1935_v5 = vpop.eup %1934 }
 0x1fd   :  { %1952 = vpow2.f32 %v1663_v62  ;;  %v1214_v43 = vmul.f32 %v2478_v42, %v1198_v18  ;;  %v1158_v7 = vadd.f32 1.0, %v1935_v5 }
 0x1fe   :  { %1954 = vpow2.f32 %v1661_v13  ;;  %v1937_v15 = vpop.eup %1936 }
 0x1ff   :  { %v1939_v37 = vpop.eup %1938  ;;  %v1156_v45 = vadd.f32 1.0, %v1937_v15  ;;  %1956 = vrcp.f32 %v1158_v7 }
 0x200   :  { %v1941_v20 = vpop.eup %1940  ;;  %v1196_v50 = vmul.f32 %v1939_v37, %v2485_v52 }
 0x201   :  { %v1199_v27 = vmul.f32 %v1941_v20, %v2489_v40  ;;  %1958 = vrcp.f32 %v1156_v45 }
 0x202   :  { %v1943_v21 = vpop.eup %1942  ;;  %v1212_v47 = vmul.f32 %v1196_v50, %v2483_v51 }
 0x203   :  { %v1945_v31 = vpop.eup %1944  ;;  %v1197_v44 = vmul.f32 %v1943_v21, %v2493_v12  ;;  %v1215_v42 = vmul.f32 %v2487_v56, %v1199_v27 }
 0x204   :  { %v1947_v58 = vpop.eup %1946  ;;  %v1202_v59 = vmul.f32 %v1945_v31, %v2500_v10 }
 0x205   :  { %v1949_v54 = vpop.eup %1948  ;;  %v1213_v63 = vmul.f32 %v1197_v44, %v2491_v19  ;;  %v1200_v52 = vmul.f32 %v1947_v58, %v2505_v14  ;;  %v1243_v3 = vpack.c.bf16 %v1215_v42, %v1214_v43 }
 0x206   :  { %v1951_v23 = vpop.eup %1950  ;;  %v1218_v26 = vmul.f32 %v2498_v24, %v1202_v59  ;;  %v1203_v40 = vmul.f32 %v1949_v54, %v2510_v11 }
 0x207   :  { %v1953_v6 = vpop.eup %1952  ;;  %v1216_v51 = vmul.f32 %v1200_v52, %v2503_v8  ;;  %v1201_v12 = vmul.f32 %v1951_v23, %v2515_v16  ;;  %v1242_v4 = vpack.c.bf16 %v1213_v63, %v1212_v47 }
 0x208   :  { %v1955_v56 = vpop.eup %1954  ;;  %v1219_v10 = vmul.f32 %v2508_v46, %v1203_v40  ;;  %v1159_v1 = vadd.f32 1.0, %v1953_v6 }
 0x209   :  { %v1217_v19 = vmul.f32 %v1201_v12, %v2513_v28  ;;  %v1157_v35 = vadd.f32 1.0, %v1955_v56  ;;  %1805 = vmatprep.mubr.bf16.mxu0 %v1242_v4  ;;  %v1957_v24 = vpop.eup %1956 }
 0x20a   :  { %v1245_v14 = vpack.c.bf16 %v1219_v10, %v1218_v26  ;;  %1960 = vrcp.f32 %v1159_v1  ;;  %1806 = vmatmul.mubr.bf16.gmra.mrb[20].mxu0 %v1243_v3  ;;  %v1206_v8 = vmul.f32 %v1957_v24, %v2521_v41  ;;  %v2636_v1 = vld [vmem:[%s2690_s5] ss:$0 sm:$0xff] }
 0x20b   :  { %1962 = vrcp.f32 %v1157_v35  ;;  %v1244_v11 = vpack.c.bf16 %v1217_v19, %v1216_v51  ;;  %v1959_v33 = vpop.eup %1958 }
 0x20c   :  { %v1204_v16 = vmul.f32 %v1959_v33, %v2528_v39  ;;  %v1222_v38 = vmul.f32 %v2519_v22, %v1206_v8 }
 0x20d   :  { %1809 = vmatprep.mubr.bf16.mxu1 %v1244_v11 }
 0x20e   :  { %1810 = vmatmul.mubr.bf16.vlgmr.msra.gmra.mrb[16].mxu1 %v1245_v14  ;;  %v1220_v46 = vmul.f32 %v1204_v16, %v2526_v55 }
 0x214   :  { %v1961_v28 = vpop.eup %1960 }
 0x215   :  { %v1963_v61 = vpop.eup %1962  ;;  %v1207_v48 = vmul.f32 %v1961_v28, %v2535_v9 }
 0x216   :  { %v1205_v49 = vmul.f32 %v1963_v61, %v2540_v34 }
 0x217   :  { %v1223_v36 = vmul.f32 %v2533_v32, %v1207_v48 }
 0x218   :  { %v1221_v53 = vmul.f32 %v1205_v49, %v2538_v2 }
 0x219   :  { %v1247_v17 = vpack.c.bf16 %v1223_v36, %v1222_v38 }
 0x21a   :  { %v1246_v41 = vpack.c.bf16 %v1221_v53, %v1220_v46 }
 0x21c   :  { %1813 = vmatprep.mubr.bf16.mxu1 %v1246_v41 }
 0x21d   :  { %1814 = vmatmul.mubr.bf16.gmra.mrb[20].mxu1 %v1247_v17 }
 0x2cc   :  { %v2569_v39 = vpop.f32.mrb[16].mxu0 }
 0x2cd   :  { %v2571_v22 = vpop.f32.mrb[17].mxu0  ;;  %v1462_v55 = vmul.f32 %v2569_v39, %v2569_v39 }
 0x2ce   :  { %v2575_v25 = vpop.f32.mrb[18].mxu0  ;;  %v1460_v2 = vmul.f32 %v2571_v22, %v2571_v22 }
 0x2cf   :  { %1480 = vadd.xlane.f32.xlu0 %v1462_v55  ;;  %v2577_v9 = vpop.f32.mrb[19].mxu0  ;;  %v1463_v32 = vmul.f32 %v2575_v25, %v2575_v25 }
 0x2d0   :  { %v1461_v34 = vmul.f32 %v2577_v9, %v2577_v9 }
 0x2d1   :  { %1482 = vadd.xlane.f32.xlu1 %v1463_v32 }
 0x2d3   :  { %1476 = vadd.xlane.f32.xlu0 %v1460_v2 }
 0x2d5   :  { %1478 = vadd.xlane.f32.xlu1 %v1461_v34 }
 0x2dd   :  { %v2585_v29 = vpop.f32.mrb[20].mxu0 }
 0x2de   :  { %v2587_v30 = vpop.f32.mrb[21].mxu0  ;;  %v1466_v57 = vmul.f32 %v2585_v29, %v2585_v29 }
 0x2df   :  { %v2591_v62 = vpop.f32.mrb[22].mxu0  ;;  %v1464_v18 = vmul.f32 %v2587_v30, %v2587_v30 }
 0x2e0   :  { %1488 = vadd.xlane.f32.xlu0 %v1466_v57  ;;  %v2593_v60 = vpop.f32.mrb[23].mxu0  ;;  %v1467_v13 = vmul.f32 %v2591_v62, %v2591_v62 }
 0x2e1   :  { %v2597_v0 = vpop.f32.mrb[16].mxu1  ;;  %v1465_v15 = vmul.f32 %v2593_v60, %v2593_v60 }
 0x2e2   :  { %1490 = vadd.xlane.f32.xlu1 %v1467_v13  ;;  %v2601_v5 = vpop.f32.mrb[17].mxu1  ;;  %v1470_v37 = vmul.f32 %v2597_v0, %v2597_v0 }
 0x2e3   :  { %v2603_v43 = vpop.f32.mrb[18].mxu1  ;;  %v1468_v20 = vmul.f32 %v2601_v5, %v2601_v5 }
 0x2e4   :  { %1484 = vadd.xlane.f32.xlu0 %v1464_v18  ;;  %v2607_v7 = vpop.f32.mrb[19].mxu1  ;;  %v1471_v45 = vmul.f32 %v2603_v43, %v2603_v43 }
 0x2e5   :  { %v1469_v50 = vmul.f32 %v2607_v7, %v2607_v7 }
 0x2e6   :  { %1486 = vadd.xlane.f32.xlu1 %v1465_v15 }
 0x2e8   :  { %1496 = vadd.xlane.f32.xlu0 %v1470_v37 }
 0x2ea   :  { %1498 = vadd.xlane.f32.xlu1 %v1471_v45 }
 0x2ec   :  { %1492 = vadd.xlane.f32.xlu0 %v1468_v20 }
 0x2ee   :  { %1494 = vadd.xlane.f32.xlu1 %v1469_v50 }
 0x2f0   :  { %v2617_v21 = vpop.f32.mrb[20].mxu1 }
 0x2f1   :  { %v2619_v27 = vpop.f32.mrb[21].mxu1  ;;  %v1474_v42 = vmul.f32 %v2617_v21, %v2617_v21 }
 0x2f2   :  { %v2621_v31 = vpop.f32.mrb[22].mxu1  ;;  %v1472_v47 = vmul.f32 %v2619_v27, %v2619_v27 }
 0x2f3   :  { %v2625_v44 = vpop.f32.mrb[23].mxu1  ;;  %v1475_v59 = vmul.f32 %v2621_v31, %v2621_v31 }
 0x2f4   :  { %v1473_v58 = vmul.f32 %v2625_v44, %v2625_v44  ;;  %1500 = vadd.xlane.f32.xlu0 %v1472_v47 }
 0x2f6   :  { %1502 = vadd.xlane.f32.xlu1 %v1473_v58 }
 0x2f8   :  { %1504 = vadd.xlane.f32.xlu0 %v1474_v42 }
 0x2fa   :  { %1506 = vadd.xlane.f32.xlu1 %v1475_v59 }
 0x35c   :  { %v1481_v54 = vpop.xlane.xlu0 %1480 }
 0x35d   :  { %v1511_v63 = vmul.f32 0.0078125, %v1481_v54 }
 0x35e   :  { %v1483_v52 = vpop.xlane.xlu1 %1482 }
 0x35f   :  { %v1527_v23 = vadd.f32 1e-06, %v1511_v63  ;;  %v1512_v26 = vmul.f32 0.0078125, %v1483_v52 }
 0x360   :  { %v1477_v40 = vpop.xlane.xlu0 %1476 }
 0x361   :  { %1964 = vrsqrt.f32 %v1527_v23  ;;  %v1528_v3 = vadd.f32 1e-06, %v1512_v26  ;;  %v1509_v6 = vmul.f32 0.0078125, %v1477_v40 }
 0x362   :  { %v1479_v51 = vpop.xlane.xlu1 %1478 }
 0x363   :  { %1966 = vrsqrt.f32 %v1528_v3  ;;  %v1525_v12 = vadd.f32 1e-06, %v1509_v6  ;;  %v1510_v4 = vmul.f32 0.0078125, %v1479_v51 }
 0x365   :  { %1968 = vrsqrt.f32 %v1525_v12  ;;  %v1526_v56 = vadd.f32 1e-06, %v1510_v4 }
 0x367   :  { %1970 = vrsqrt.f32 %v1526_v56 }
 0x36b   :  { %v1965_v10 = vpop.eup %1964 }
 0x36c   :  { %v1559_v19 = vmul.f32 %v1965_v10, %v2569_v39 }
 0x36d   :  { %v1489_v35 = vpop.xlane.xlu0 %1488  ;;  %v1967_v14 = vpop.eup %1966 }
 0x36e   :  { %v1515_v24 = vmul.f32 0.0078125, %v1489_v35  ;;  %v1582_v11 = vmul.f32 %v2636_v1, %v1559_v19  ;;  %v1560_v33 = vmul.f32 %v1967_v14, %v2575_v25 }
 0x36f   :  { %v1491_v8 = vpop.xlane.xlu1 %1490  ;;  %v1969_v16 = vpop.eup %1968 }
 0x370   :  { %v1531_v38 = vadd.f32 1e-06, %v1515_v24  ;;  %v1516_v46 = vmul.f32 0.0078125, %v1491_v8  ;;  %1598 = vst [vmem:[#allocation12 + $0x10] sm:$0xff] %v1582_v11  ;;  %v1583_v28 = vmul.f32 %v2636_v1, %v1560_v33  ;;  %v1557_v61 = vmul.f32 %v1969_v16, %v2571_v22 }
 0x371   :  { %v1485_v48 = vpop.xlane.xlu0 %1484  ;;  %v1971_v49 = vpop.eup %1970 }
 0x372   :  { %1972 = vrsqrt.f32 %v1531_v38  ;;  %v1532_v36 = vadd.f32 1e-06, %v1516_v46  ;;  %v1513_v53 = vmul.f32 0.0078125, %v1485_v48  ;;  %1599 = vst [vmem:[#allocation12 + $0x18] sm:$0xff] %v1583_v28  ;;  %v1580_v17 = vmul.f32 %v2636_v1, %v1557_v61 }
 0x373   :  { %v1558_v41 = vmul.f32 %v1971_v49, %v2577_v9  ;;  %v1487_v39 = vpop.xlane.xlu1 %1486 }
 0x374   :  { %1974 = vrsqrt.f32 %v1532_v36  ;;  %v1529_v55 = vadd.f32 1e-06, %v1513_v53  ;;  %v1514_v25 = vmul.f32 0.0078125, %v1487_v39  ;;  %1596 = vst [vmem:[#allocation12] sm:$0xff] %v1580_v17 }
 0x375   :  { %v1581_v32 = vmul.f32 %v2636_v1, %v1558_v41  ;;  %v1497_v2 = vpop.xlane.xlu0 %1496 }
 0x376   :  { %1976 = vrsqrt.f32 %v1529_v55  ;;  %v1530_v22 = vadd.f32 1e-06, %v1514_v25  ;;  %v1519_v34 = vmul.f32 0.0078125, %v1497_v2 }
 0x377   :  { %1597 = vst [vmem:[#allocation12 + $0x8] sm:$0xff] %v1581_v32  ;;  %v1499_v57 = vpop.xlane.xlu1 %1498 }
 0x378   :  { %1978 = vrsqrt.f32 %v1530_v22  ;;  %v1535_v13 = vadd.f32 1e-06, %v1519_v34  ;;  %v1520_v18 = vmul.f32 0.0078125, %v1499_v57 }
 0x379   :  { %v1493_v15 = vpop.xlane.xlu0 %1492 }
 0x37a   :  { %1980 = vrsqrt.f32 %v1535_v13  ;;  %v1536_v37 = vadd.f32 1e-06, %v1520_v18  ;;  %v1517_v9 = vmul.f32 0.0078125, %v1493_v15 }
 0x37b   :  { %v1495_v45 = vpop.xlane.xlu1 %1494 }
 0x37c   :  { %v1973_v20 = vpop.eup %1972  ;;  %1982 = vrsqrt.f32 %v1536_v37  ;;  %v1533_v50 = vadd.f32 1e-06, %v1517_v9  ;;  %v1518_v47 = vmul.f32 0.0078125, %v1495_v45 }
 0x37d   :  { %v1563_v58 = vmul.f32 %v1973_v20, %v2585_v29 }
 0x37e   :  { %v1975_v42 = vpop.eup %1974  ;;  %1984 = vrsqrt.f32 %v1533_v50  ;;  %v1534_v59 = vadd.f32 1e-06, %v1518_v47 }
 0x37f   :  { %v1586_v54 = vmul.f32 %v2636_v1, %v1563_v58  ;;  %v1564_v63 = vmul.f32 %v1975_v42, %v2591_v62 }
 0x380   :  { %v1977_v52 = vpop.eup %1976  ;;  %1986 = vrsqrt.f32 %v1534_v59 }
 0x381   :  { %1602 = vst [vmem:[#allocation12 + $0x30] sm:$0xff] %v1586_v54  ;;  %v1587_v23 = vmul.f32 %v2636_v1, %v1564_v63  ;;  %v1561_v26 = vmul.f32 %v1977_v52, %v2587_v30  ;;  %v1501_v40 = vpop.xlane.xlu0 %1500 }
 0x382   :  { %v1979_v3 = vpop.eup %1978  ;;  %v1521_v6 = vmul.f32 0.0078125, %v1501_v40 }
 0x383   :  { %1603 = vst [vmem:[#allocation12 + $0x38] sm:$0xff] %v1587_v23  ;;  %v1584_v29 = vmul.f32 %v2636_v1, %v1561_v26  ;;  %v1562_v51 = vmul.f32 %v1979_v3, %v2593_v60  ;;  %v1503_v12 = vpop.xlane.xlu1 %1502 }
 0x384   :  { %v1981_v4 = vpop.eup %1980  ;;  %v1537_v56 = vadd.f32 1e-06, %v1521_v6  ;;  %v1522_v10 = vmul.f32 0.0078125, %v1503_v12 }
 0x385   :  { %1600 = vst [vmem:[#allocation12 + $0x20] sm:$0xff] %v1584_v29  ;;  %v1585_v62 = vmul.f32 %v2636_v1, %v1562_v51  ;;  %v1567_v19 = vmul.f32 %v1981_v4, %v2597_v0  ;;  %v1505_v35 = vpop.xlane.xlu0 %1504 }
 0x386   :  { %v1983_v14 = vpop.eup %1982  ;;  %1988 = vrsqrt.f32 %v1537_v56  ;;  %v1538_v30 = vadd.f32 1e-06, %v1522_v10  ;;  %v1523_v24 = vmul.f32 0.0078125, %v1505_v35 }
 0x387   :  { %1601 = vst [vmem:[#allocation12 + $0x28] sm:$0xff] %v1585_v62  ;;  %v1590_v11 = vmul.f32 %v2636_v1, %v1567_v19  ;;  %v1568_v33 = vmul.f32 %v1983_v14, %v2603_v43  ;;  %v1507_v60 = vpop.xlane.xlu1 %1506 }
 0x388   :  { %v1985_v8 = vpop.eup %1984  ;;  %1990 = vrsqrt.f32 %v1538_v30  ;;  %v1539_v16 = vadd.f32 1e-06, %v1523_v24  ;;  %v1524_v38 = vmul.f32 0.0078125, %v1507_v60 }
 0x389   :  { %1606 = vst [vmem:[#allocation12 + $0x50] sm:$0xff] %v1590_v11  ;;  %v1591_v46 = vmul.f32 %v2636_v1, %v1568_v33  ;;  %v1565_v0 = vmul.f32 %v1985_v8, %v2601_v5 }
 0x38a   :  { %v1987_v28 = vpop.eup %1986  ;;  %1992 = vrsqrt.f32 %v1539_v16  ;;  %v1540_v61 = vadd.f32 1e-06, %v1524_v38 }
 0x38b   :  { %1607 = vst [vmem:[#allocation12 + $0x58] sm:$0xff] %v1591_v46  ;;  %v1588_v48 = vmul.f32 %v2636_v1, %v1565_v0  ;;  %v1566_v49 = vmul.f32 %v1987_v28, %v2607_v7 }
 0x38c   :  { %1994 = vrsqrt.f32 %v1540_v61 }
 0x38d   :  { %1604 = vst [vmem:[#allocation12 + $0x40] sm:$0xff] %v1588_v48  ;;  %v1589_v43 = vmul.f32 %v2636_v1, %v1566_v49 }
 0x38f   :  { %1605 = vst [vmem:[#allocation12 + $0x48] sm:$0xff] %v1589_v43 }
 0x390   :  { %v1989_v36 = vpop.eup %1988 }
 0x391   :  { %v1569_v53 = vmul.f32 %v1989_v36, %v2619_v27 }
 0x392   :  { %v1991_v17 = vpop.eup %1990 }
 0x393   :  { %v1592_v41 = vmul.f32 %v2636_v1, %v1569_v53  ;;  %v1570_v5 = vmul.f32 %v1991_v17, %v2625_v44 }
 0x394   :  { %v1993_v39 = vpop.eup %1992 }
 0x395   :  { %1608 = vst [vmem:[#allocation12 + $0x60] sm:$0xff] %v1592_v41  ;;  %v1593_v55 = vmul.f32 %v2636_v1, %v1570_v5  ;;  %v1571_v25 = vmul.f32 %v1993_v39, %v2617_v21 }
 0x396   :  { %v1995_v7 = vpop.eup %1994 }
 0x397   :  { %1609 = vst [vmem:[#allocation12 + $0x68] sm:$0xff] %v1593_v55  ;;  %v1594_v32 = vmul.f32 %v2636_v1, %v1571_v25  ;;  %v1572_v2 = vmul.f32 %v1995_v7, %v2621_v31 }
 0x399   :  { %1610 = vst [vmem:[#allocation12 + $0x70] sm:$0xff] %v1594_v32  ;;  %v1595_v27 = vmul.f32 %v2636_v1, %v1572_v2 }
 0x39b   :  { %1611 = vst [vmem:[#allocation12 + $0x78] sm:$0xff] %v1595_v27 }
 0x39c   :  { %1616 = vsyncadd [#allocation6], 1984  ;;  %s2124_s5 = smov [#allocation12]  }
 0x39d   :  { %s1617_s26 = sshll.u32 %s2124_s5, 4  ;;  %s1618_s26 = int_to_ptr.vmem [resolvable:$true] %s1617_s26 }
 0x39e   :  { %s2084_s27 = scalar_lea.vmem %s1618_s26, 64  ;;  %s2088_s28 = scalar_lea.vmem %s1618_s26, 2048 }
 0x39f   :  { %p2085_p4 = scmp.ne.s32.totalorder %s1618_s26, %s2084_s27  ;;  %p2089_p5 = scmp.lt.s32.totalorder %s1618_s26, %s1618_s26 }
 0x3a0   :  { %p2090_p6 = scmp.lt.s32.totalorder %s2088_s28, %s2084_s27 }
 0x3a2   :  { %p2091_p7 = por %p2090_p6, %p2089_p5 }
 0x3a4   :  { %p2092_p8 = pnand %p2091_p7, %p2085_p4 }
 0x3a6   :  { %2095 = shalt.err (!%p2092_p8)
}
 0x3a7   :  { %s2096_s9 = scalar_lea.hbm %s2691_s6, 64 }
 0x3a8   :  { %p2097_p9 = scmp.ne.s32.totalorder %s2691_s6, %s2096_s9  ;;  %p2100_p10 = scmp.lt.u32.totalorder %s2096_s9, %s2691_s6 }
 0x3aa   :  { %p2102_p11 = pnand %p2100_p10, %p2097_p9 }
 0x3ac   :  { %2105 = shalt.err (!%p2102_p11)
}
 0x3ad   :  { %1623 = dma.vmem_to_hbm [thread:$0]  %s1618_s26, 64, %s2691_s6, [#allocation6], %s2115_s7, %s2115_s7, %s2116_s8  }
 0x3ae   :  { %2112 = dma.done.wait [#allocation6], 2048  }
 0x3af   :  { %2113 = vsyncadd [#allocation6], 4294965248 }
 0x3b0   :  { %1627 = vsyncpa [#allocation5], 1 }
 0x3b1   :  { %1628 = vsyncpa [#allocation8], 1 }
 0x3b2   :  { %1629 = vsyncpa [#allocation11], 1 }
 0x3b3   :  { %1630 = vsyncpa [#allocation6], 1 }

</bundles_post_ra>
